<compile_context>
chip_gen: v6e
topology: v6e:2x2x1
jax: 0.10.0
libtpu: 0.0.40
codegen_flags: <defaults>
</compile_context>

<pallas_src>
import copy

import jax
import jax.numpy as jnp
from jax.experimental import pallas as pl
from jax.experimental.pallas import tpu as pltpu


# ----------------------------- Pallas kernel ------------------------------ #

def _round_up(x, m):
    return ((x + m - 1) // m) * m


def _matmul_bias_kernel(x_ref, wt_ref, b_ref, o_ref):
    # x_ref : (tm, tk) bf16   activations tile
    # wt_ref: (tk, tn) bf16   transposed-weight tile
    # b_ref : (1,  tn) f32    bias tile
    # o_ref : (tm, tn) f32    output tile (block index constant across k ->
    #                         stays resident in VMEM and acts as accumulator)
    k = pl.program_id(2)

    @pl.when(k == 0)
    def _init():
        o_ref[...] = jnp.zeros_like(o_ref)

    o_ref[...] += jnp.dot(x_ref[...], wt_ref[...],
                          preferred_element_type=jnp.float32)

    @pl.when(k == pl.num_programs(2) - 1)
    def _finalize():
        # Bias rides in the writeback epilogue only (not per K step).
        o_ref[...] = o_ref[...] + b_ref[...]


def _pallas_matmul(x2d_bf, wt_pad, b2d, *, tm_pref=512, tn_pref=1024):
    """y = x2d_bf @ wt_pad + b2d, f32 accumulation / f32 output.

    x2d_bf : (M, K_pad) bf16   activations, K already padded to tk multiple
    wt_pad : (K_pad, N) bf16   transposed weight, K zero-padded once offline
    b2d    : (1, N)     f32    bias
    M / N need NOT be tile multiples — edge blocks are partial (masked write).
    """
    M, K_pad = x2d_bf.shape
    Kw, N = wt_pad.shape
    assert K_pad == Kw, (K_pad, Kw)

    # K tile: full K when it fits (K <= 2048), otherwise 1024 (K_pad is a
    # multiple of 1024 by construction in LinearModule.__init__).
    tk = K_pad if K_pad <= 2048 else 1024

    # M/N tiles: big by default, shrunk (and alignment-rounded) for small dims.
    tm = tm_pref if M >= tm_pref else max(16, _round_up(M, 16))
    if N >= tn_pref:
        tn = tn_pref
    else:
        tn = _round_up(N, 256 if N >= 256 else 128)

    # Guarantee >=2 blocks on the parallel axes so both v7x TCs get work.
    if pl.cdiv(M, tm) * pl.cdiv(N, tn) < 2 and M >= 32:
        tm = max(16, _round_up(-(-M // 2), 16))

    grid = (pl.cdiv(M, tm), pl.cdiv(N, tn), K_pad // tk)

    cost = pl.CostEstimate(
        flops=2 * M * N * K_pad,
        transcendentals=0,
        bytes_accessed=(M * K_pad * 2 + K_pad * N * 2 + M * N * 4 + N * 4),
    )

    return pl.pallas_call(
        _matmul_bias_kernel,
        out_shape=jax.ShapeDtypeStruct((M, N), jnp.float32),
        grid_spec=pltpu.PrefetchScalarGridSpec(
            num_scalar_prefetch=0,
            grid=grid,
            in_specs=[
                pl.BlockSpec((tm, tk), lambda i, j, k: (i, k)),   # x
                pl.BlockSpec((tk, tn), lambda i, j, k: (k, j)),   # W^T
                pl.BlockSpec((1, tn), lambda i, j, k: (0, j)),    # bias
            ],
            out_specs=pl.BlockSpec((tm, tn), lambda i, j, k: (i, j)),
        ),
        compiler_params=pltpu.CompilerParams(
            dimension_semantics=("parallel", "parallel", "arbitrary"),
            vmem_limit_bytes=32 * 1024 * 1024,
        ),
        cost_estimate=cost,
    )(x2d_bf, wt_pad, b2d)


@jax.jit
def _pallas_linear_3d(x, wt_pad, b2d):
    """(B, S, H) @ W^T + b -> (B, S, N), jitted end to end."""
    B, S, H = x.shape
    N = b2d.shape[1]
    K_pad = wt_pad.shape[0]
    x2d = x.reshape(B * S, H).astype(jnp.bfloat16)
    if H != K_pad:                         # K padding only (M/N are unpadded)
        x2d = jnp.pad(x2d, ((0, 0), (0, K_pad - H)))
    y2d = _pallas_matmul(x2d, wt_pad, b2d)
    return y2d.reshape(B, S, N)


@jax.jit
def _xla_linear_3d(x, weight, bias):
    # Small-problem fast path: XLA's fused matmul wins at these sizes.
    return (jnp.einsum("bsh,oh->bso", x, weight,
                       preferred_element_type=jnp.float32)
            + bias).astype(jnp.float32)


def _use_pallas(M, K, N):
    # Sub-lane-width N / tiny problems: fixed pallas_call overhead dominates.
    return (N >= 128) and (K >= 128) and (M >= 32) and (2 * M * K * N >= 3e7)


# ------------------------- ModulesToSaveWrapper ---------------------------- #

class LinearModule:
    """Stand-in for the wrapped torch.nn.Linear (params + forward).

    Weight is kept in PyTorch (out_features, in_features) layout for semantic
    fidelity; the K-padded bf16 (K, N) transpose and the (1, N) f32 bias used
    by the Pallas kernel are precomputed ONCE here (weights are static in
    PEFT), so no per-forward weight copy/transpose/pad is ever emitted.
    """

    def __init__(self, weight, bias):
        self.weight = jnp.asarray(weight, dtype=jnp.float32)   # (N, K)
        self.bias = jnp.asarray(bias, dtype=jnp.float32)       # (N,)
        N, K = self.weight.shape

        # tk choice mirrored in _pallas_matmul (full K when K <= 2048).
        tk = _round_up(K, 128) if K <= 2048 else 1024
        K_pad = _round_up(K, tk)

        wt = self.weight.T.astype(jnp.bfloat16)                # (K, N) bf16
        if K_pad != K:
            wt = jnp.pad(wt, ((0, K_pad - K), (0, 0)))         # zero-pad K
        self._wt_pad = wt                                       # (K_pad, N)
        self._b2d = self.bias.reshape(1, N)                     # (1, N) f32

    def __deepcopy__(self, memo):
        # jnp arrays are immutable; sharing them is a faithful equivalent of
        # torch's parameter deepcopy and skips re-padding the static weight.
        new = self.__class__.__new__(self.__class__)
        new.__dict__.update(self.__dict__)
        return new

    def __call__(self, x):
        # x: (batch, seq, hidden) -> (batch, seq, out_features), float32
        batch, seq, hidden = x.shape
        n_out = self.weight.shape[0]
        if _use_pallas(batch * seq, hidden, n_out):
            return _pallas_linear_3d(x, self._wt_pad, self._b2d)
        return _xla_linear_3d(x, self.weight, self.bias)


class ModulesToSaveWrapper:
    """Faithful port of LLMPruner/peft ModulesToSaveWrapper forward semantics."""
    # TODO(synk): torch.nn.ModuleDict parameter registration has no JAX
    # equivalent; a plain dict of copied modules preserves forward semantics.

    def __init__(self, module_to_save, adapter_name):
        self.original_module = module_to_save
        self.modules_to_save = {}
        self.update(adapter_name)
        self.active_adapter = adapter_name

    def update(self, adapter_name):
        self.modules_to_save[adapter_name] = copy.deepcopy(self.original_module)

    def forward(self, *args, **kwargs):
        if self.active_adapter not in self.modules_to_save:
            return self.original_module(*args, **kwargs)
        return self.modules_to_save[self.active_adapter](*args, **kwargs)

    __call__ = forward


# --------------------------------- main ------------------------------------ #

if __name__ == "__main__":
    key = jax.random.PRNGKey(0)
    k_x, k_w, k_b = jax.random.split(key, 3)

    # Shapes large enough to exercise the tiled Pallas path.
    batch, seq, hidden, out_features = 2, 128, 1024, 512

    x = jax.random.normal(k_x, (batch, seq, hidden), dtype=jnp.float32)
    bound = 1.0 / (hidden ** 0.5)
    weight = jax.random.uniform(k_w, (out_features, hidden),
                                minval=-bound, maxval=bound, dtype=jnp.float32)
    bias = jax.random.uniform(k_b, (out_features,),
                              minval=-bound, maxval=bound, dtype=jnp.float32)

    base = LinearModule(weight, bias)
    wrapper = ModulesToSaveWrapper(base, adapter_name="default")

    # Active-adapter path (deepcopied module) — tiled Pallas matmul.
    y = jax.block_until_ready(wrapper(x))

    # bf16-operand / f32-accumulate reference.
    y_ref = (jnp.einsum("bsh,oh->bso",
                        x.astype(jnp.bfloat16), weight.astype(jnp.bfloat16),
                        preferred_element_type=jnp.float32)
             + bias).astype(jnp.float32)
    assert y.shape == (batch, seq, out_features)
    assert jnp.allclose(y, y_ref, atol=2e-2, rtol=2e-2), \
        float(jnp.max(jnp.abs(y - y_ref)))

    # Fallback path: unknown active adapter -> original_module.
    wrapper.active_adapter = "not_registered"
    y_fallback = jax.block_until_ready(wrapper(x))
    assert jnp.allclose(y_fallback, y_ref, atol=2e-2, rtol=2e-2)
    wrapper.active_adapter = "default"

    # Ragged (non-tile-multiple) M and N — exercises masked partial blocks.
    x_r = jax.random.normal(k_x, (1, 200, hidden), dtype=jnp.float32)
    w_r = jax.random.uniform(k_w, (384, hidden),
                             minval=-bound, maxval=bound, dtype=jnp.float32)
    b_r = jax.random.uniform(k_b, (384,),
                             minval=-bound, maxval=bound, dtype=jnp.float32)
    ragged = ModulesToSaveWrapper(LinearModule(w_r, b_r), "default")
    y_r = jax.block_until_ready(ragged(x_r))
    y_r_ref = (jnp.einsum("bsh,oh->bso",
                          x_r.astype(jnp.bfloat16), w_r.astype(jnp.bfloat16),
                          preferred_element_type=jnp.float32)
               + b_r).astype(jnp.float32)
    assert jnp.allclose(y_r, y_r_ref, atol=2e-2, rtol=2e-2), \
        float(jnp.max(jnp.abs(y_r - y_r_ref)))

    # Tiny / sub-lane-width problem -> small-problem fast path (plain XLA).
    x_small = jax.random.normal(k_x, (2, 8, 32), dtype=jnp.float32)
    w_small = jax.random.uniform(k_w, (16, 32), minval=-0.2, maxval=0.2,
                                 dtype=jnp.float32)
    b_small = jax.random.uniform(k_b, (16,), minval=-0.2, maxval=0.2,
                                 dtype=jnp.float32)
    small = ModulesToSaveWrapper(LinearModule(w_small, b_small), "default")
    y_small = jax.block_until_ready(small(x_small))
    y_small_ref = x_small @ w_small.T + b_small
    assert jnp.allclose(y_small, y_small_ref, atol=1e-4, rtol=1e-4)

    print("KERNEL_OK")
</pallas_src>

<mosaic_0001>
module attributes {stable_mosaic.version = 11 : i64} {
  func.func @_matmul_bias_kernel(%arg0: i32, %arg1: i32, %arg2: i32, %arg3: memref<128x1024xbf16, #tpu.memory_space<vmem>>, %arg4: memref<1024x512xbf16, #tpu.memory_space<vmem>>, %arg5: memref<1x512xf32, #tpu.memory_space<vmem>>, %arg6: memref<128x512xf32, #tpu.memory_space<vmem>>) attributes {dimension_semantics = [#tpu.dimension_semantics<parallel>, #tpu.dimension_semantics<parallel>, #tpu.dimension_semantics<arbitrary>], iteration_bounds = array<i64: 2, 1, 1>, scalar_prefetch = 0 : i64, scratch_operands = 0 : i64, tpu.core_type = #tpu.core_type<tc>, window_params = [{transform_indices = @transform_0, window_bounds = array<i64: 128, 1024>}, {transform_indices = @transform_1, window_bounds = array<i64: 1024, 512>}, {transform_indices = @transform_2, window_bounds = array<i64: 1, 512>}, {transform_indices = @transform_3, window_bounds = array<i64: 128, 512>}]} {
    %c0_i32 = arith.constant 0 : i32
    %0 = arith.cmpi eq, %arg2, %c0_i32 : i32
    %1 = arith.extui %0 : i1 to i32
    %c0_i32_0 = arith.constant 0 : i32
    %2 = arith.cmpi ne, %1, %c0_i32_0 : i32
    scf.if %2 {
      %cst_10 = arith.constant 0.000000e+00 : f32
      %12 = vector.broadcast %cst_10 : f32 to vector<128x512xf32>
      %c0_11 = arith.constant 0 : index
      %c0_12 = arith.constant 0 : index
      %13 = vector.load %arg6[%c0_11, %c0_12] : memref<128x512xf32, #tpu.memory_space<vmem>>, vector<128x512xf32>
      tpu.vector_store %arg6[%c0_11, %c0_12], %12 {strides = array<i32>} : memref<128x512xf32, #tpu.memory_space<vmem>>, vector<128x512xf32>,
    } else {
    }
    %c0 = arith.constant 0 : index
    %c0_1 = arith.constant 0 : index
    %3 = vector.load %arg6[%c0, %c0_1] : memref<128x512xf32, #tpu.memory_space<vmem>>, vector<128x512xf32>
    %c0_2 = arith.constant 0 : index
    %c0_3 = arith.constant 0 : index
    %4 = vector.load %arg3[%c0_2, %c0_3] : memref<128x1024xbf16, #tpu.memory_space<vmem>>, vector<128x1024xbf16>
    %c0_4 = arith.constant 0 : index
    %c0_5 = arith.constant 0 : index
    %5 = vector.load %arg4[%c0_4, %c0_5] : memref<1024x512xbf16, #tpu.memory_space<vmem>>, vector<1024x512xbf16>
    %cst = arith.constant dense<0.000000e+00> : vector<128x512xf32>
    %6 = tpu.matmul %4, %5, %cst {dimension_numbers = #tpu.dot_dimension_numbers<[1], [0], [0], [1], [0, 0, 1, 1], [], []>} : vector<128x1024xbf16>, vector<1024x512xbf16>, vector<128x512xf32> -> vector<128x512xf32>
    %7 = arith.addf %3, %6 : vector<128x512xf32>
    %c0_6 = arith.constant 0 : index
    %c0_7 = arith.constant 0 : index
    %8 = vector.load %arg6[%c0_6, %c0_7] : memref<128x512xf32, #tpu.memory_space<vmem>>, vector<128x512xf32>
    tpu.vector_store %arg6[%c0_6, %c0_7], %7 {strides = array<i32>} : memref<128x512xf32, #tpu.memory_space<vmem>>, vector<128x512xf32>,
    %c0_i32_8 = arith.constant 0 : i32
    %9 = arith.cmpi eq, %arg2, %c0_i32_8 : i32
    %10 = arith.extui %9 : i1 to i32
    %c0_i32_9 = arith.constant 0 : i32
    %11 = arith.cmpi ne, %10, %c0_i32_9 : i32
    scf.if %11 {
      %c0_10 = arith.constant 0 : index
      %c0_11 = arith.constant 0 : index
      %12 = vector.load %arg6[%c0_10, %c0_11] : memref<128x512xf32, #tpu.memory_space<vmem>>, vector<128x512xf32>
      %c0_12 = arith.constant 0 : index
      %c0_13 = arith.constant 0 : index
      %13 = vector.load %arg5[%c0_12, %c0_13] : memref<1x512xf32, #tpu.memory_space<vmem>>, vector<1x512xf32>
      %14 = vector.broadcast %13 : vector<1x512xf32> to vector<128x512xf32>
      %15 = arith.addf %12, %14 : vector<128x512xf32>
      %c0_14 = arith.constant 0 : index
      %c0_15 = arith.constant 0 : index
      %16 = vector.load %arg6[%c0_14, %c0_15] : memref<128x512xf32, #tpu.memory_space<vmem>>, vector<128x512xf32>
      tpu.vector_store %arg6[%c0_14, %c0_15], %15 {strides = array<i32>} : memref<128x512xf32, #tpu.memory_space<vmem>>, vector<128x512xf32>,
    } else {
    }
    return
  }
  func.func @transform_0(%arg0: i32, %arg1: i32, %arg2: i32) -> (i32, i32) {
    %c0_i32 = arith.constant 0 : i32
    return %arg0, %arg2 : i32, i32
  }
  func.func @transform_1(%arg0: i32, %arg1: i32, %arg2: i32) -> (i32, i32) {
    %c0_i32 = arith.constant 0 : i32
    return %arg2, %arg1 : i32, i32
  }
  func.func @transform_2(%arg0: i32, %arg1: i32, %arg2: i32) -> (i32, i32) {
    %c0_i32 = arith.constant 0 : i32
    %c0_i32_0 = arith.constant 0 : i32
    return %c0_i32, %arg1 : i32, i32
  }
  func.func @transform_3(%arg0: i32, %arg1: i32, %arg2: i32) -> (i32, i32) {
    %c0_i32 = arith.constant 0 : i32
    return %arg0, %arg1 : i32, i32
  }
}

</mosaic_0001>

<bundles_post_ra>
// kernel: _pallas_linear_3d.1
= control target key start
LH: loop header
LB: loop body
LE: loop exit
PB: predicated region body
PF: predicated region fallthrough
CT: control target
= control target key end

     0   :  { %8 = vsyncpa [#allocation3], 0  ;;  %s6334_s0 = inlined_call_operand.vmem [shape: bf16[256,1024], index: 0, kind: input, shape index: {}]   ;;  %s6335_s1 = inlined_call_operand.vmem [shape: bf16[1024,512], index: 1, kind: input, shape index: {}]   ;;  %s6336_s2 = inlined_call_operand.vmem [shape: f32[1,512], index: 2, kind: input, shape index: {}]   ;;  %s6337_s3 = inlined_call_operand.hbm [shape: f32[256,512], index: 3, kind: output, shape index: {}]  }
   0x1   :  { %10 = vsyncpa [#allocation3 + $0x1], 0  ;;  %s4589_s12 = smov 0   ;;  %s4591_s13 = smov 0  }
   0x2   :  { %s4593_s14 = smov 0   ;;  %s4595_s15 = smov 0  }
   0x3   :  { %s4597_s16 = smov 0   ;;  %s4599_s17 = smov 0  }
   0x4 LB: > { %s3706_s18 = sadd.s32 4294967295, %s4564_s17   ;;  %s3707_s19 = sadd.s32 4294967294, %s4564_s17   ;;  %s4564_s17 = sphi %s4599_s17, %s16_s17   ;;  %s4560_s16 = sphi %s4597_s16, %s6447_s16   ;;  %s4556_s15 = sphi %s4595_s15, %s6446_s15   ;;  %s4552_s14 = sphi %s4593_s14, %s6445_s14   ;;  %s4548_s13 = sphi %s4591_s13, %s6444_s13   ;;  %s4544_s12 = sphi %s4589_s12, %s6443_s12  }
   0x5   : > { %s35_s20 = sadd.s32 1, %s4560_s16  ;;  %s126_s21 = sadd.s32 1, %s4552_s14 }
   0x6   : > { %p37_p0 = scmp.ge.s32.totalorder %s35_s20, 2  ;;  %p136_p1 = scmp.ne.s32.totalorder %s4552_s14, %s4548_s13 }
   0x7   : > { %p137_p2 = scmp.eq.s32.totalorder %s3706_s18, 1  ;;  %p142_p3 = scmp.ne.s32.totalorder %s4548_s13, %s4544_s12 }
   0x8   : > { %s6449_s20 = smov (%p37_p0, %s35_s20), 0  ;;  %p143_p5 = scmp.eq.s32.totalorder %s3707_s19, 1 }
   0x9   : > { %p4629_p4 = por %p137_p2, %p136_p1  ;;  %s121_s23 = ssub.s32 %s4560_s16, %s6449_s20 }
   0xa   : > { %p3712_p6 = scmp.ge.s32.totalorder %s4564_s17, 1  ;;  %p124_p7 = scmp.eq.s32.totalorder %s121_s23, 0 }
   0xb   : > { %p4636_p8 = por %p143_p5, %p142_p3  ;;  %p199_p9 = scmp.lt.s32.totalorder %s4564_s17, 3 }
   0xc   : > { %s4642_s25 = scalar_select %p124_p7, %s4552_s14, %s126_s21  }
   0xd   : > { %p200_p10 = pnand %p3712_p6, %p199_p9 }
   0xf   : > { %203 = sbr.rel (%p200_p10) target bundleno = 552 (0x228), region = 32 }
  0x14   : > { %v4104_v0 = vld [vmem:[%s6335_s1 + $0xe4] ss:$16 sps:$4 sm:$0xff]   ;;  %v4108_v2 = vld [vmem:[%s6335_s1 + $0xe0] ss:$16 sps:$4 sm:$0xff]   ;;  %s3714_s8 = sshll.u32 %s4556_s15, 4  ;;  %s239_s6 = sand.u32 1, %s4548_s13  }
  0x15   : > { %v4106_v1 = vld [vmem:[%s6335_s1 + $0x2e4] ss:$16 sps:$4 sm:$0xff]   ;;  %2325 = vmatprep.subr.bf16.mxu0 %v4104_v0  ;;  %v4109_v3 = vld [vmem:[%s6335_s1 + $0x2e0] ss:$16 sps:$4 sm:$0xff]   ;;  %p244_p11 = scmp.lt.s32.totalorder %s3714_s8, 31  ;;  %s3713_s10 = sshll.u32 %s239_s6, 9 }
  0x16   : > { %2438 = vmatprep.subr.bf16.mxu1 %v4106_v1  ;;  %v4110_v4 = vld [vmem:[%s6335_s1 + $0xc4] ss:$16 sps:$4 sm:$0xff]   ;;  %2326 = vmatpush1.bf16.msra.mxu0 %v4108_v2  ;;  %v4114_v6 = vld [vmem:[%s6335_s1 + $0xc0] ss:$16 sps:$4 sm:$0xff]   ;;  %s5897_s11 = scalar_lea.vmem [#allocation2], %s3713_s10  ;;  %s4566_s27 = smov [#allocation2]  }
  0x17   : > { %2439 = vmatpush1.bf16.msra.mxu1 %v4109_v3  ;;  %v4112_v5 = vld [vmem:[%s6335_s1 + $0x2c4] ss:$16 sps:$4 sm:$0xff]   ;;  %2327 = vmatprep.subr.bf16.mxu0 %v4110_v4  ;;  %v4115_v7 = vld [vmem:[%s6335_s1 + $0x2c0] ss:$16 sps:$4 sm:$0xff]   ;;  %s6451_s8 = smov (!%p244_p11, %s3714_s8), 31  ;;  %s3591_s18 = sshll.u32 %s5897_s11, 4  ;;  %s6282_s18 = int_to_ptr.vmem [resolvable:$true] %s3591_s18 }
  0x18   : > { %2440 = vmatprep.subr.bf16.mxu1 %v4112_v5  ;;  %v4116_v8 = vld [vmem:[%s6335_s1 + $0xa4] ss:$16 sps:$4 sm:$0xff]   ;;  %v4120_v10 = vld [vmem:[%s6335_s1 + $0xa0] ss:$16 sps:$4 sm:$0xff]   ;;  %s4043_s23 = sshll.u32 %s6451_s8, 5  ;;  %s4488_s26 = scalar_lea.vmem %s6282_s18, 8192 }
  0x19   : > { %v4118_v9 = vld [vmem:[%s6335_s1 + $0x2a4] ss:$16 sps:$4 sm:$0xff]   ;;  %v4121_v11 = vld [vmem:[%s6335_s1 + $0x2a0] ss:$16 sps:$4 sm:$0xff]   ;;  %s4780_s7 = scalar_lea.vmem %s6334_s0, %s4043_s23  ;;  %p4489_p12 = scmp.ne.s32.totalorder %s6282_s18, %s4488_s26 }
  0x1a   : > { %2328 = vmatpush1.bf16.msra.mxu0 %v4114_v6  ;;  %v4122_v12 = vld [vmem:[%s6335_s1 + $0x84] ss:$16 sps:$4 sm:$0xff]   ;;  %v4126_v14 = vld [vmem:[%s6335_s1 + $0x80] ss:$16 sps:$4 sm:$0xff]   ;;  %v406_v50 = vld [vmem:[%s4780_s7 + $0x8] sm:$0xff]  ;;  %s4492_s28 = sshll.u32 %s4566_s27, 4  ;;  %s4493_s28 = int_to_ptr.vmem [resolvable:$false] %s4492_s28 }
  0x1b   : > { %2441 = vmatpush1.bf16.msra.mxu1 %v4115_v7  ;;  %2329 = vmatprep.subr.bf16.mxu0 %v4116_v8  ;;  %v4124_v13 = vld [vmem:[%s6335_s1 + $0x284] ss:$16 sps:$4 sm:$0xff]   ;;  %v4127_v15 = vld [vmem:[%s6335_s1 + $0x280] ss:$16 sps:$4 sm:$0xff]   ;;  %v410_v51 = vld [vmem:[%s4780_s7 + $0x28] sm:$0xff]  ;;  %p4490_p13 = pnand %p4489_p12, %p4629_p4  ;;  %s4494_s29 = scalar_lea.vmem %s4493_s28, 16384 }
  0x1c   : > { %2442 = vmatprep.subr.bf16.mxu1 %v4118_v9  ;;  %v4128_v16 = vld [vmem:[%s6335_s1 + $0x64] ss:$16 sps:$4 sm:$0xff]   ;;  %v4132_v18 = vld [vmem:[%s6335_s1 + $0x60] ss:$16 sps:$4 sm:$0xff]   ;;  %v4806_v55 = vcombine.high %v406_v50, %v410_v51  ;;  %p4495_p1 = scmp.lt.s32.totalorder %s6282_s18, %s4493_s28  ;;  %p4496_p2 = scmp.lt.s32.totalorder %s4494_s29, %s4488_s26 }
  0x1d   : > { %v4130_v17 = vld [vmem:[%s6335_s1 + $0x264] ss:$16 sps:$4 sm:$0xff]   ;;  %v4133_v19 = vld [vmem:[%s6335_s1 + $0x260] ss:$16 sps:$4 sm:$0xff]   ;;  %p4491_p0 = pneg %p4490_p13 }
  0x1e   : > { %2330 = vmatpush1.bf16.msra.mxu0 %v4120_v10  ;;  %v4134_v20 = vld [vmem:[%s6335_s1 + $0x44] ss:$16 sps:$4 sm:$0xff]   ;;  %v4138_v22 = vld [vmem:[%s6335_s1 + $0x40] ss:$16 sps:$4 sm:$0xff]   ;;  %2470 = vmatprep.mubr.bf16.mxu1 %v4806_v55  ;;  %p4497_p3 = por %p4496_p2, %p4495_p1 }
  0x1f   : > { %2443 = vmatpush1.bf16.msra.mxu1 %v4121_v11  ;;  %2331 = vmatprep.subr.bf16.mxu0 %v4122_v12  ;;  %v4136_v21 = vld [vmem:[%s6335_s1 + $0x244] ss:$16 sps:$4 sm:$0xff]   ;;  %v4139_v23 = vld [vmem:[%s6335_s1 + $0x240] ss:$16 sps:$4 sm:$0xff]   ;;  %v4867_v12 = vcombine.low %v406_v50, %v410_v51 }
  0x20   : > { %2444 = vmatprep.subr.bf16.mxu1 %v4124_v13  ;;  %v4140_v24 = vld [vmem:[%s6335_s1 + $0x24] ss:$16 sps:$4 sm:$0xff]   ;;  %v4144_v26 = vld [vmem:[%s6335_s1 + $0x20] ss:$16 sps:$4 sm:$0xff]   ;;  %p4498_p5 = pnand %p4497_p3, %p4491_p0 }
  0x21   : > { %v4142_v25 = vld [vmem:[%s6335_s1 + $0x224] ss:$16 sps:$4 sm:$0xff]   ;;  %v4145_v27 = vld [vmem:[%s6335_s1 + $0x220] ss:$16 sps:$4 sm:$0xff]  }
  0x22   : > { %2332 = vmatpush1.bf16.msra.mxu0 %v4126_v14  ;;  %v4146_v28 = vld [vmem:[%s6335_s1 + $0x4] ss:$16 sps:$4 sm:$0xff]   ;;  %v4150_v30 = vld [vmem:[%s6335_s1] ss:$16 sps:$4 sm:$0xff]   ;;  %v414_v14 = vld [vmem:[%s4780_s7 + $0x48] sm:$0xff] }
  0x23   : > { %2445 = vmatpush1.bf16.msra.mxu1 %v4127_v15  ;;  %2333 = vmatprep.subr.bf16.mxu0 %v4128_v16  ;;  %v4148_v29 = vld [vmem:[%s6335_s1 + $0x204] ss:$16 sps:$4 sm:$0xff]   ;;  %v4151_v31 = vld [vmem:[%s6335_s1 + $0x200] ss:$16 sps:$4 sm:$0xff]   ;;  %v418_v15 = vld [vmem:[%s4780_s7 + $0x68] sm:$0xff] }
  0x24   : > { %2446 = vmatprep.subr.bf16.mxu1 %v4130_v17  ;;  %v4152_v32 = vld [vmem:[%s6335_s1 + $0x1e4] ss:$16 sps:$4 sm:$0xff]   ;;  %v4156_v34 = vld [vmem:[%s6335_s1 + $0x1e0] ss:$16 sps:$4 sm:$0xff]  }
  0x25   : > { %v4154_v33 = vld [vmem:[%s6335_s1 + $0x3e4] ss:$16 sps:$4 sm:$0xff]   ;;  %v4157_v35 = vld [vmem:[%s6335_s1 + $0x3e0] ss:$16 sps:$4 sm:$0xff]  }
  0x26   : > { %2334 = vmatpush1.bf16.msra.mxu0 %v4132_v18  ;;  %v4158_v36 = vld [vmem:[%s6335_s1 + $0x1c4] ss:$16 sps:$4 sm:$0xff]   ;;  %v4162_v38 = vld [vmem:[%s6335_s1 + $0x1c0] ss:$16 sps:$4 sm:$0xff]  }
  0x27   : > { %2447 = vmatpush1.bf16.msra.mxu1 %v4133_v19  ;;  %2335 = vmatprep.subr.bf16.mxu0 %v4134_v20  ;;  %v4160_v37 = vld [vmem:[%s6335_s1 + $0x3c4] ss:$16 sps:$4 sm:$0xff]   ;;  %v4163_v39 = vld [vmem:[%s6335_s1 + $0x3c0] ss:$16 sps:$4 sm:$0xff]   ;;  %v4880_v19 = vcombine.high %v414_v14, %v418_v15 }
  0x28   : > { %2448 = vmatprep.subr.bf16.mxu1 %v4136_v21  ;;  %v4164_v40 = vld [vmem:[%s6335_s1 + $0x1a4] ss:$16 sps:$4 sm:$0xff]   ;;  %v4168_v42 = vld [vmem:[%s6335_s1 + $0x1a0] ss:$16 sps:$4 sm:$0xff]  }
  0x29   : > { %v4166_v41 = vld [vmem:[%s6335_s1 + $0x3a4] ss:$16 sps:$4 sm:$0xff]   ;;  %v4169_v43 = vld [vmem:[%s6335_s1 + $0x3a0] ss:$16 sps:$4 sm:$0xff]  }
  0x2a   : > { %2336 = vmatpush1.bf16.msra.mxu0 %v4138_v22  ;;  %v4170_v44 = vld [vmem:[%s6335_s1 + $0x184] ss:$16 sps:$4 sm:$0xff]   ;;  %v4174_v46 = vld [vmem:[%s6335_s1 + $0x180] ss:$16 sps:$4 sm:$0xff]  }
  0x2b   : > { %2449 = vmatpush1.bf16.msra.mxu1 %v4139_v23  ;;  %2337 = vmatprep.subr.bf16.mxu0 %v4140_v24  ;;  %v4172_v45 = vld [vmem:[%s6335_s1 + $0x384] ss:$16 sps:$4 sm:$0xff]   ;;  %v4175_v47 = vld [vmem:[%s6335_s1 + $0x380] ss:$16 sps:$4 sm:$0xff]  }
  0x2c   : > { %2450 = vmatprep.subr.bf16.mxu1 %v4142_v25  ;;  %v405_v48 = vld [vmem:[%s4780_s7] sm:$0xff] }
  0x2d   : > { %v409_v49 = vld [vmem:[%s4780_s7 + $0x20] sm:$0xff] }
  0x2e   : > { %2338 = vmatpush1.bf16.msra.mxu0 %v4144_v26  ;;  %v4176_v52 = vld [vmem:[%s6335_s1 + $0x164] ss:$16 sps:$4 sm:$0xff]   ;;  %v4801_v53 = vcombine.high %v405_v48, %v409_v49  ;;  %v4180_v56 = vld [vmem:[%s6335_s1 + $0x160] ss:$16 sps:$4 sm:$0xff]   ;;  %v4865_v11 = vcombine.low %v405_v48, %v409_v49 }
  0x2f   : > { %2451 = vmatpush1.bf16.msra.mxu1 %v4145_v27  ;;  %2339 = vmatprep.subr.bf16.mxu0 %v4146_v28  ;;  %v4178_v54 = vld [vmem:[%s6335_s1 + $0x364] ss:$16 sps:$4 sm:$0xff]   ;;  %v4181_v57 = vld [vmem:[%s6335_s1 + $0x360] ss:$16 sps:$4 sm:$0xff]  }
  0x30   : > { %2452 = vmatprep.subr.bf16.mxu1 %v4148_v29  ;;  %2357 = vmatprep.mubr.bf16.mxu0 %v4801_v53  ;;  %v4182_v58 = vld [vmem:[%s6335_s1 + $0x144] ss:$16 sps:$4 sm:$0xff]   ;;  %v4186_v60 = vld [vmem:[%s6335_s1 + $0x140] ss:$16 sps:$4 sm:$0xff]   ;;  %v4908_v29 = vcombine.low %v414_v14, %v418_v15 }
  0x31   : > { %v4184_v59 = vld [vmem:[%s6335_s1 + $0x344] ss:$16 sps:$4 sm:$0xff]   ;;  %v4187_v61 = vld [vmem:[%s6335_s1 + $0x340] ss:$16 sps:$4 sm:$0xff]  }
  0x32   : > { %2340 = vmatpush1.bf16.msra.mxu0 %v4150_v30  ;;  %v4188_v62 = vld [vmem:[%s6335_s1 + $0x124] ss:$16 sps:$4 sm:$0xff]   ;;  %v4192_v0 = vld [vmem:[%s6335_s1 + $0x120] ss:$16 sps:$4 sm:$0xff]   ;;  %v422_v30 = vld [vmem:[%s4780_s7 + $0x88] sm:$0xff] }
  0x33   : > { %2453 = vmatpush1.bf16.msra.mxu1 %v4151_v31  ;;  %2341 = vmatprep.subr.bf16.mxu0 %v4152_v32  ;;  %v4190_v63 = vld [vmem:[%s6335_s1 + $0x324] ss:$16 sps:$4 sm:$0xff]   ;;  %v4193_v1 = vld [vmem:[%s6335_s1 + $0x320] ss:$16 sps:$4 sm:$0xff]   ;;  %v426_v31 = vld [vmem:[%s4780_s7 + $0xa8] sm:$0xff] }
  0x34   : > { %2454 = vmatprep.subr.bf16.mxu1 %v4154_v33  ;;  %v4194_v2 = vld [vmem:[%s6335_s1 + $0x104] ss:$16 sps:$4 sm:$0xff]   ;;  %v4198_v4 = vld [vmem:[%s6335_s1 + $0x100] ss:$16 sps:$4 sm:$0xff]  }
  0x35   : > { %v4196_v3 = vld [vmem:[%s6335_s1 + $0x304] ss:$16 sps:$4 sm:$0xff]   ;;  %v4199_v5 = vld [vmem:[%s6335_s1 + $0x300] ss:$16 sps:$4 sm:$0xff]  }
  0x36   : > { %2342 = vmatpush2.bf16.msra.mxu0 %v4156_v34  ;;  %v4202_v6 = vld [vmem:[%s6335_s1 + $0x4e4] ss:$16 sps:$4 sm:$0xff]   ;;  %v4200_v8 = vld [vmem:[%s6335_s1 + $0x4e0] ss:$16 sps:$4 sm:$0xff]  }
  0x37   : > { %2455 = vmatpush2.bf16.msra.mxu1 %v4157_v35  ;;  %2343 = vmatprep.subr.bf16.mxu0 %v4158_v36  ;;  %v4205_v7 = vld [vmem:[%s6335_s1 + $0x6e4] ss:$16 sps:$4 sm:$0xff]   ;;  %v4203_v9 = vld [vmem:[%s6335_s1 + $0x6e0] ss:$16 sps:$4 sm:$0xff]   ;;  %v4920_v35 = vcombine.high %v422_v30, %v426_v31 }
  0x38   : > { %2456 = vmatprep.subr.bf16.mxu1 %v4160_v37  ;;  %v413_v10 = vld [vmem:[%s4780_s7 + $0x40] sm:$0xff] }
  0x39   : > { %v417_v13 = vld [vmem:[%s4780_s7 + $0x60] sm:$0xff] }
  0x3a   : > { %2344 = vmatpush2.bf16.msra.mxu0 %v4162_v38  ;;  %v4208_v16 = vld [vmem:[%s6335_s1 + $0x4c4] ss:$16 sps:$4 sm:$0xff]   ;;  %v4878_v18 = vcombine.high %v413_v10, %v417_v13  ;;  %v4206_v20 = vld [vmem:[%s6335_s1 + $0x4c0] ss:$16 sps:$4 sm:$0xff]   ;;  %v4906_v28 = vcombine.low %v413_v10, %v417_v13 }
  0x3b   : > { %2457 = vmatpush2.bf16.msra.mxu1 %v4163_v39  ;;  %2345 = vmatprep.subr.bf16.mxu0 %v4164_v40  ;;  %v4211_v17 = vld [vmem:[%s6335_s1 + $0x6c4] ss:$16 sps:$4 sm:$0xff]   ;;  %v4209_v21 = vld [vmem:[%s6335_s1 + $0x6c0] ss:$16 sps:$4 sm:$0xff]  }
  0x3c   : > { %2458 = vmatprep.subr.bf16.mxu1 %v4166_v41  ;;  %v4214_v22 = vld [vmem:[%s6335_s1 + $0x4a4] ss:$16 sps:$4 sm:$0xff]   ;;  %v4212_v24 = vld [vmem:[%s6335_s1 + $0x4a0] ss:$16 sps:$4 sm:$0xff]  }
  0x3d   : > { %v4217_v23 = vld [vmem:[%s6335_s1 + $0x6a4] ss:$16 sps:$4 sm:$0xff]   ;;  %v4215_v25 = vld [vmem:[%s6335_s1 + $0x6a0] ss:$16 sps:$4 sm:$0xff]  }
  0x3e   : > { %2346 = vmatpush2.bf16.msra.mxu0 %v4168_v42  ;;  %v421_v26 = vld [vmem:[%s4780_s7 + $0x80] sm:$0xff] }
  0x3f   : > { %2459 = vmatpush2.bf16.msra.mxu1 %v4169_v43  ;;  %2347 = vmatprep.subr.bf16.mxu0 %v4170_v44  ;;  %v425_v27 = vld [vmem:[%s4780_s7 + $0xa0] sm:$0xff] }
  0x40   : > { %2460 = vmatprep.subr.bf16.mxu1 %v4172_v45  ;;  %v4220_v32 = vld [vmem:[%s6335_s1 + $0x484] ss:$16 sps:$4 sm:$0xff]   ;;  %v4918_v34 = vcombine.high %v421_v26, %v425_v27  ;;  %v4218_v36 = vld [vmem:[%s6335_s1 + $0x480] ss:$16 sps:$4 sm:$0xff]   ;;  %v4946_v44 = vcombine.low %v421_v26, %v425_v27  ;;  %v4948_v45 = vcombine.low %v422_v30, %v426_v31 }
  0x41   : > { %v4223_v33 = vld [vmem:[%s6335_s1 + $0x684] ss:$16 sps:$4 sm:$0xff]   ;;  %v4221_v37 = vld [vmem:[%s6335_s1 + $0x680] ss:$16 sps:$4 sm:$0xff]  }
  0x42   : > { %2348 = vmatpush2.bf16.msra.mxu0 %v4174_v46  ;;  %v4226_v38 = vld [vmem:[%s6335_s1 + $0x464] ss:$16 sps:$4 sm:$0xff]   ;;  %v4224_v40 = vld [vmem:[%s6335_s1 + $0x460] ss:$16 sps:$4 sm:$0xff]   ;;  %v430_v46 = vld [vmem:[%s4780_s7 + $0xc8] sm:$0xff] }
  0x43   : > { %2461 = vmatpush2.bf16.msra.mxu1 %v4175_v47  ;;  %2349 = vmatprep.subr.bf16.mxu0 %v4176_v52  ;;  %v4229_v39 = vld [vmem:[%s6335_s1 + $0x664] ss:$16 sps:$4 sm:$0xff]   ;;  %v4227_v41 = vld [vmem:[%s6335_s1 + $0x660] ss:$16 sps:$4 sm:$0xff]   ;;  %v434_v47 = vld [vmem:[%s4780_s7 + $0xe8] sm:$0xff] }
  0x44   : > { %2462 = vmatprep.subr.bf16.mxu1 %v4178_v54  ;;  %v429_v42 = vld [vmem:[%s4780_s7 + $0xc0] sm:$0xff]  ;;  %v4960_v51 = vcombine.high %v430_v46, %v434_v47 }
  0x45   : > { %v433_v43 = vld [vmem:[%s4780_s7 + $0xe0] sm:$0xff] }
  0x46   : > { %2350 = vmatpush2.bf16.msra.mxu0 %v4180_v56  ;;  %v4232_v48 = vld [vmem:[%s6335_s1 + $0x444] ss:$16 sps:$4 sm:$0xff]   ;;  %v4958_v50 = vcombine.high %v429_v42, %v433_v43  ;;  %v4230_v52 = vld [vmem:[%s6335_s1 + $0x440] ss:$16 sps:$4 sm:$0xff]  }
  0x47   : > { %2463 = vmatpush2.bf16.msra.mxu1 %v4181_v57  ;;  %2351 = vmatprep.subr.bf16.mxu0 %v4182_v58  ;;  %v4235_v49 = vld [vmem:[%s6335_s1 + $0x644] ss:$16 sps:$4 sm:$0xff]   ;;  %v4233_v54 = vld [vmem:[%s6335_s1 + $0x640] ss:$16 sps:$4 sm:$0xff]  }
  0x48   : > { %2464 = vmatprep.subr.bf16.mxu1 %v4184_v59  ;;  %v4238_v56 = vld [vmem:[%s6335_s1 + $0x424] ss:$16 sps:$4 sm:$0xff]   ;;  %v4236_v58 = vld [vmem:[%s6335_s1 + $0x420] ss:$16 sps:$4 sm:$0xff]  }
  0x49   : > { %v4241_v57 = vld [vmem:[%s6335_s1 + $0x624] ss:$16 sps:$4 sm:$0xff]   ;;  %v4254_v26 = vld [vmem:[%s6335_s1 + $0x5c0] ss:$16 sps:$4 sm:$0xff]  }
  0x4a   : > { %2352 = vmatpush2.bf16.msra.mxu0 %v4186_v60  ;;  %v437_v59 = vld [vmem:[%s4780_s7 + $0x100] sm:$0xff] }
  0x4b   : > { %2465 = vmatpush2.bf16.msra.mxu1 %v4187_v61  ;;  %2353 = vmatprep.subr.bf16.mxu0 %v4188_v62  ;;  %v441_v60 = vld [vmem:[%s4780_s7 + $0x120] sm:$0xff]  ;;  %v4983_v61 = vcombine.low %v429_v42, %v433_v43  ;;  %v4985_v62 = vcombine.low %v430_v46, %v434_v47 }
  0x4c   : > { %2466 = vmatprep.subr.bf16.mxu1 %v4190_v63  ;;  %v438_v63 = vld [vmem:[%s4780_s7 + $0x108] sm:$0xff]  ;;  %v445_v10 = vld [vmem:[%s4780_s7 + $0x140] sm:$0xff]  ;;  %v5020_v14 = vcombine.low %v437_v59, %v441_v60 }
  0x4d   : > { %v449_v13 = vld [vmem:[%s4780_s7 + $0x160] sm:$0xff] }
  0x4e   : > { %2354 = vmatpush2.bf16.msra.mxu0 %v4192_v0  ;;  %v442_v0 = vld [vmem:[%s4780_s7 + $0x128] sm:$0xff]  ;;  %v4257_v27 = vld [vmem:[%s6335_s1 + $0x7c0] ss:$16 sps:$4 sm:$0xff]   ;;  %v4262_v30 = vld [vmem:[%s6335_s1 + $0x5a4] ss:$16 sps:$4 sm:$0xff]  }
  0x4f   : > { %2467 = vmatpush2.bf16.msra.mxu1 %v4193_v1  ;;  %2355 = vmatprep.subr.bf16.mxu0 %v4194_v2  ;;  %v4239_v1 = vld [vmem:[%s6335_s1 + $0x620] ss:$16 sps:$4 sm:$0xff]   ;;  %v4244_v2 = vld [vmem:[%s6335_s1 + $0x404] ss:$16 sps:$4 sm:$0xff]   ;;  %v5022_v15 = vcombine.low %v438_v63, %v442_v0 }
  0x50   : > { %2468 = vmatprep.subr.bf16.mxu1 %v4196_v3  ;;  %v4247_v3 = vld [vmem:[%s6335_s1 + $0x604] ss:$16 sps:$4 sm:$0xff]  }
  0x51   : > { %v4265_v31 = vld [vmem:[%s6335_s1 + $0x7a4] ss:$16 sps:$4 sm:$0xff]  }
  0x52   : > { %2356 = vmatpush2.bf16.msra.mxu0 %v4198_v4  ;;  %v4998_v4 = vcombine.high %v437_v59, %v441_v60  ;;  %v4268_v42 = vld [vmem:[%s6335_s1 + $0x584] ss:$16 sps:$4 sm:$0xff]  }
  0x53   : > { %2469 = vmatpush2.bf16.msra.mxu1 %v4199_v5  ;;  %2551 = vmatprep.subr.bf16.mxu0 %v4202_v6  ;;  %v5000_v5 = vcombine.high %v438_v63, %v442_v0  ;;  %v4242_v6 = vld [vmem:[%s6335_s1 + $0x400] ss:$16 sps:$4 sm:$0xff]   ;;  %v4271_v43 = vld [vmem:[%s6335_s1 + $0x784] ss:$16 sps:$4 sm:$0xff]   ;;  %v462_v0 = vld [vmem:[%s4780_s7 + $0x1c8] sm:$0xff] }
  0x54   : > { %2664 = vmatprep.subr.bf16.mxu1 %v4205_v7  ;;  %v4245_v7 = vld [vmem:[%s6335_s1 + $0x600] ss:$16 sps:$4 sm:$0xff]  }
  0x55   : > { %2358 = vmatmul.mubr.bf16.vlgmr.msra.gmra.mxu0 %v4865_v11  ;;  %v465_v59 = vld [vmem:[%s4780_s7 + $0x1e0] sm:$0xff] }
  0x56   : > { %2471 = vmatmul.mubr.bf16.vlgmr.msra.gmra.mxu1 %v4867_v12  ;;  %2552 = vmatpush1.bf16.msra.mxu0 %v4200_v8  ;;  %v4250_v8 = vld [vmem:[%s6335_s1 + $0x5e4] ss:$16 sps:$4 sm:$0xff]  }
  0x57   : > { %2665 = vmatpush1.bf16.msra.mxu1 %v4203_v9  ;;  %2553 = vmatprep.subr.bf16.mxu0 %v4208_v16  ;;  %v4253_v9 = vld [vmem:[%s6335_s1 + $0x7e4] ss:$16 sps:$4 sm:$0xff]   ;;  %v446_v16 = vld [vmem:[%s4780_s7 + $0x148] sm:$0xff] }
  0x58   : > { %2666 = vmatprep.subr.bf16.mxu1 %v4211_v17  ;;  %2367 = vmatprep.mubr.bf16.mxu0 %v4878_v18  ;;  %v450_v17 = vld [vmem:[%s4780_s7 + $0x168] sm:$0xff] }
  0x59   : > { %2480 = vmatprep.mubr.bf16.mxu1 %v4880_v19 }
  0x5a   : > { %2554 = vmatpush1.bf16.msra.mxu0 %v4206_v20  ;;  %v4248_v20 = vld [vmem:[%s6335_s1 + $0x5e0] ss:$16 sps:$4 sm:$0xff]  }
  0x5b   : > { %2667 = vmatpush1.bf16.msra.mxu1 %v4209_v21  ;;  %2555 = vmatprep.subr.bf16.mxu0 %v4214_v22  ;;  %v4251_v21 = vld [vmem:[%s6335_s1 + $0x7e0] ss:$16 sps:$4 sm:$0xff]   ;;  %v4256_v22 = vld [vmem:[%s6335_s1 + $0x5c4] ss:$16 sps:$4 sm:$0xff]  }
  0x5c   : > { %2668 = vmatprep.subr.bf16.mxu1 %v4217_v23  ;;  %v4259_v23 = vld [vmem:[%s6335_s1 + $0x7c4] ss:$16 sps:$4 sm:$0xff]  }
  0x5d   : > { %2368 = vmatmul.mubr.bf16.gmra.mxu0 %v4906_v28 }
  0x5e   : > { %2481 = vmatmul.mubr.bf16.gmra.mxu1 %v4908_v29  ;;  %2556 = vmatpush1.bf16.msra.mxu0 %v4212_v24  ;;  %v5038_v24 = vcombine.high %v445_v10, %v449_v13 }
  0x5f   : > { %2669 = vmatpush1.bf16.msra.mxu1 %v4215_v25  ;;  %2557 = vmatprep.subr.bf16.mxu0 %v4220_v32  ;;  %v5040_v25 = vcombine.high %v446_v16, %v450_v17  ;;  %v4260_v32 = vld [vmem:[%s6335_s1 + $0x5a0] ss:$16 sps:$4 sm:$0xff]  }
  0x60   : > { %2670 = vmatprep.subr.bf16.mxu1 %v4223_v33  ;;  %2377 = vmatprep.mubr.bf16.mxu0 %v4918_v34  ;;  %v4263_v33 = vld [vmem:[%s6335_s1 + $0x7a0] ss:$16 sps:$4 sm:$0xff]  }
  0x61   : > { %2490 = vmatprep.mubr.bf16.mxu1 %v4920_v35 }
  0x62   : > { %2558 = vmatpush1.bf16.msra.mxu0 %v4218_v36  ;;  %v453_v36 = vld [vmem:[%s4780_s7 + $0x180] sm:$0xff] }
  0x63   : > { %2671 = vmatpush1.bf16.msra.mxu1 %v4221_v37  ;;  %2559 = vmatprep.subr.bf16.mxu0 %v4226_v38  ;;  %v5065_v37 = vcombine.low %v445_v10, %v449_v13  ;;  %v5067_v38 = vcombine.low %v446_v16, %v450_v17  ;;  %v4286_v10 = vld [vmem:[%s6335_s1 + $0x524] ss:$16 sps:$4 sm:$0xff]   ;;  %v4284_v16 = vld [vmem:[%s6335_s1 + $0x520] ss:$16 sps:$4 sm:$0xff]  }
  0x64   : > { %2672 = vmatprep.subr.bf16.mxu1 %v4229_v39  ;;  %v457_v39 = vld [vmem:[%s4780_s7 + $0x1a0] sm:$0xff] }
  0x65   : > { %2378 = vmatmul.mubr.bf16.gmra.mxu0 %v4946_v44  ;;  %v5078_v46 = vcombine.high %v453_v36, %v457_v39  ;;  %v5106_v60 = vcombine.low %v453_v36, %v457_v39  ;;  %v4289_v13 = vld [vmem:[%s6335_s1 + $0x724] ss:$16 sps:$4 sm:$0xff]   ;;  %v4287_v17 = vld [vmem:[%s6335_s1 + $0x720] ss:$16 sps:$4 sm:$0xff]  }
  0x66   : > { %2491 = vmatmul.mubr.bf16.gmra.mxu1 %v4948_v45  ;;  %2560 = vmatpush1.bf16.msra.mxu0 %v4224_v40  ;;  %v454_v40 = vld [vmem:[%s4780_s7 + $0x188] sm:$0xff]  ;;  %v4290_v36 = vld [vmem:[%s6335_s1 + $0x500] ss:$16 sps:$4 sm:$0xff]  }
  0x67   : > { %2673 = vmatpush1.bf16.msra.mxu1 %v4227_v41  ;;  %2561 = vmatprep.subr.bf16.mxu0 %v4232_v48  ;;  %v458_v41 = vld [vmem:[%s4780_s7 + $0x1a8] sm:$0xff]  ;;  %v4266_v48 = vld [vmem:[%s6335_s1 + $0x580] ss:$16 sps:$4 sm:$0xff]  }
  0x68   : > { %2674 = vmatprep.subr.bf16.mxu1 %v4235_v49  ;;  %2387 = vmatprep.mubr.bf16.mxu0 %v4958_v50  ;;  %v5080_v47 = vcombine.high %v454_v40, %v458_v41  ;;  %v4269_v49 = vld [vmem:[%s6335_s1 + $0x780] ss:$16 sps:$4 sm:$0xff]   ;;  %v5108_v63 = vcombine.low %v454_v40, %v458_v41  ;;  %v4298_v40 = vld [vmem:[%s6335_s1 + $0xec] ss:$16 sps:$4 sm:$0xff]  }
  0x69   : > { %2500 = vmatprep.mubr.bf16.mxu1 %v4960_v51  ;;  %v4293_v39 = vld [vmem:[%s6335_s1 + $0x700] ss:$16 sps:$4 sm:$0xff]   ;;  %v4301_v41 = vld [vmem:[%s6335_s1 + $0x2ec] ss:$16 sps:$4 sm:$0xff]  }
  0x6a   : > { %2562 = vmatpush1.bf16.msra.mxu0 %v4230_v52  ;;  %v4274_v52 = vld [vmem:[%s6335_s1 + $0x564] ss:$16 sps:$4 sm:$0xff]  }
  0x6b   : > { %2675 = vmatpush1.bf16.msra.mxu1 %v4233_v54  ;;  %2563 = vmatprep.subr.bf16.mxu0 %v4238_v56  ;;  %v4277_v54 = vld [vmem:[%s6335_s1 + $0x764] ss:$16 sps:$4 sm:$0xff]   ;;  %v4272_v56 = vld [vmem:[%s6335_s1 + $0x560] ss:$16 sps:$4 sm:$0xff]  }
  0x6c   : > { %2676 = vmatprep.subr.bf16.mxu1 %v4241_v57  ;;  %v4275_v57 = vld [vmem:[%s6335_s1 + $0x760] ss:$16 sps:$4 sm:$0xff]  }
  0x6d   : > { %2388 = vmatmul.mubr.bf16.gmra.mxu0 %v4983_v61 }
  0x6e   : > { %2501 = vmatmul.mubr.bf16.gmra.mxu1 %v4985_v62  ;;  %2564 = vmatpush1.bf16.msra.mxu0 %v4236_v58  ;;  %v461_v58 = vld [vmem:[%s4780_s7 + $0x1c0] sm:$0xff] }
  0x6f   : > { %2677 = vmatpush1.bf16.msra.mxu1 %v4239_v1  ;;  %2565 = vmatprep.subr.bf16.mxu0 %v4244_v2  ;;  %v466_v1 = vld [vmem:[%s4780_s7 + $0x1e8] sm:$0xff]  ;;  %v4280_v2 = vld [vmem:[%s6335_s1 + $0x544] ss:$16 sps:$4 sm:$0xff]  }
  0x70   : > { %2678 = vmatprep.subr.bf16.mxu1 %v4247_v3  ;;  %2397 = vmatprep.mubr.bf16.mxu0 %v4998_v4  ;;  %v4283_v3 = vld [vmem:[%s6335_s1 + $0x744] ss:$16 sps:$4 sm:$0xff]  }
  0x71   : > { %2510 = vmatprep.mubr.bf16.mxu1 %v5000_v5 }
  0x72   : > { %2566 = vmatpush1.bf16.msra.mxu0 %v4242_v6  ;;  %v5118_v6 = vcombine.high %v461_v58, %v465_v59 }
  0x73   : > { %2679 = vmatpush1.bf16.msra.mxu1 %v4245_v7  ;;  %2567 = vmatprep.subr.bf16.mxu0 %v4250_v8  ;;  %v5120_v7 = vcombine.high %v462_v0, %v466_v1  ;;  %v4278_v8 = vld [vmem:[%s6335_s1 + $0x540] ss:$16 sps:$4 sm:$0xff]  }
  0x74   : > { %2680 = vmatprep.subr.bf16.mxu1 %v4253_v9  ;;  %v4281_v9 = vld [vmem:[%s6335_s1 + $0x740] ss:$16 sps:$4 sm:$0xff]  }
  0x75   : > { %2398 = vmatmul.mubr.bf16.gmra.mxu0 %v5020_v14 }
  0x76   : > { %2511 = vmatmul.mubr.bf16.gmra.mxu1 %v5022_v15  ;;  %2568 = vmatpush2.bf16.msra.mxu0 %v4248_v20  ;;  %v407_v20 = vld [vmem:[%s4780_s7 + $0x10] sm:$0xff] }
  0x77   : > { %2681 = vmatpush2.bf16.msra.mxu1 %v4251_v21  ;;  %2569 = vmatprep.subr.bf16.mxu0 %v4256_v22  ;;  %v411_v21 = vld [vmem:[%s4780_s7 + $0x30] sm:$0xff]  ;;  %v5146_v22 = vcombine.low %v461_v58, %v465_v59  ;;  %v4304_v58 = vld [vmem:[%s6335_s1 + $0xcc] ss:$16 sps:$4 sm:$0xff]  }
  0x78   : > { %2682 = vmatprep.subr.bf16.mxu1 %v4259_v23  ;;  %2407 = vmatprep.mubr.bf16.mxu0 %v5038_v24  ;;  %v5148_v23 = vcombine.low %v462_v0, %v466_v1  ;;  %v4307_v59 = vld [vmem:[%s6335_s1 + $0x2cc] ss:$16 sps:$4 sm:$0xff]  }
  0x79   : > { %2520 = vmatprep.mubr.bf16.mxu1 %v5040_v25 }
  0x7a   : > { %2570 = vmatpush2.bf16.msra.mxu0 %v4254_v26  ;;  %v408_v26 = vld [vmem:[%s4780_s7 + $0x18] sm:$0xff] }
  0x7b   : > { %2683 = vmatpush2.bf16.msra.mxu1 %v4257_v27  ;;  %2571 = vmatprep.subr.bf16.mxu0 %v4262_v30  ;;  %v412_v27 = vld [vmem:[%s4780_s7 + $0x38] sm:$0xff]  ;;  %v4292_v30 = vld [vmem:[%s6335_s1 + $0x504] ss:$16 sps:$4 sm:$0xff]  }
  0x7c   : > { %2684 = vmatprep.subr.bf16.mxu1 %v4265_v31  ;;  %v4295_v31 = vld [vmem:[%s6335_s1 + $0x704] ss:$16 sps:$4 sm:$0xff]  }
  0x7d   : > { %2408 = vmatmul.mubr.bf16.gmra.mxu0 %v5065_v37 }
  0x7e   : > { %2521 = vmatmul.mubr.bf16.gmra.mxu1 %v5067_v38  ;;  %2572 = vmatpush2.bf16.msra.mxu0 %v4260_v32  ;;  %v5158_v32 = vcombine.high %v407_v20, %v411_v21 }
  0x7f   : > { %2685 = vmatpush2.bf16.msra.mxu1 %v4263_v33  ;;  %2573 = vmatprep.subr.bf16.mxu0 %v4268_v42  ;;  %v5160_v33 = vcombine.high %v408_v26, %v412_v27  ;;  %v4296_v42 = vld [vmem:[%s6335_s1 + $0xe8] ss:$16 sps:$4 sm:$0xff]  }
  0x80   : > { %2686 = vmatprep.subr.bf16.mxu1 %v4271_v43  ;;  %2417 = vmatprep.mubr.bf16.mxu0 %v5078_v46  ;;  %v415_v43 = vld [vmem:[%s4780_s7 + $0x50] sm:$0xff] }
  0x81   : > { %2530 = vmatprep.mubr.bf16.mxu1 %v5080_v47 }
  0x82   : > { %2574 = vmatpush2.bf16.msra.mxu0 %v4266_v48  ;;  %v419_v48 = vld [vmem:[%s4780_s7 + $0x70] sm:$0xff] }
  0x83   : > { %2687 = vmatpush2.bf16.msra.mxu1 %v4269_v49  ;;  %2575 = vmatprep.subr.bf16.mxu0 %v4274_v52  ;;  %v5183_v49 = vcombine.low %v407_v20, %v411_v21  ;;  %v5185_v52 = vcombine.low %v408_v26, %v412_v27  ;;  %v5198_v0 = vcombine.high %v415_v43, %v419_v48  ;;  %v424_v20 = vld [vmem:[%s4780_s7 + $0x98] sm:$0xff] }
  0x84   : > { %2688 = vmatprep.subr.bf16.mxu1 %v4277_v54  ;;  %v416_v54 = vld [vmem:[%s4780_s7 + $0x58] sm:$0xff] }
  0x85   : > { %2418 = vmatmul.mubr.bf16.gmra.mxu0 %v5106_v60  ;;  %v428_v21 = vld [vmem:[%s4780_s7 + $0xb8] sm:$0xff] }
  0x86   : > { %2531 = vmatmul.mubr.bf16.gmra.mxu1 %v5108_v63  ;;  %2576 = vmatpush2.bf16.msra.mxu0 %v4272_v56  ;;  %v420_v56 = vld [vmem:[%s4780_s7 + $0x78] sm:$0xff] }
  0x87   : > { %2689 = vmatpush2.bf16.msra.mxu1 %v4275_v57  ;;  %2577 = vmatprep.subr.bf16.mxu0 %v4280_v2  ;;  %v4299_v57 = vld [vmem:[%s6335_s1 + $0x2e8] ss:$16 sps:$4 sm:$0xff]   ;;  %v5200_v1 = vcombine.high %v416_v54, %v420_v56 }
  0x88   : > { %2690 = vmatprep.subr.bf16.mxu1 %v4283_v3  ;;  %2427 = vmatprep.mubr.bf16.mxu0 %v5118_v6  ;;  %v4302_v2 = vld [vmem:[%s6335_s1 + $0xc8] ss:$16 sps:$4 sm:$0xff]  }
  0x89   : > { %2540 = vmatprep.mubr.bf16.mxu1 %v5120_v7  ;;  %v4305_v3 = vld [vmem:[%s6335_s1 + $0x2c8] ss:$16 sps:$4 sm:$0xff]  }
  0x8a   : > { %2578 = vmatpush2.bf16.msra.mxu0 %v4278_v8  ;;  %v4310_v8 = vld [vmem:[%s6335_s1 + $0xac] ss:$16 sps:$4 sm:$0xff]   ;;  %v4308_v26 = vld [vmem:[%s6335_s1 + $0xa8] ss:$16 sps:$4 sm:$0xff]  }
  0x8b   : > { %2691 = vmatpush2.bf16.msra.mxu1 %v4281_v9  ;;  %2579 = vmatprep.subr.bf16.mxu0 %v4286_v10  ;;  %v4313_v9 = vld [vmem:[%s6335_s1 + $0x2ac] ss:$16 sps:$4 sm:$0xff]   ;;  %v423_v10 = vld [vmem:[%s4780_s7 + $0x90] sm:$0xff]  ;;  %v4311_v27 = vld [vmem:[%s6335_s1 + $0x2a8] ss:$16 sps:$4 sm:$0xff]  }
  0x8c   : > { %2692 = vmatprep.subr.bf16.mxu1 %v4289_v13  ;;  %v427_v13 = vld [vmem:[%s4780_s7 + $0xb0] sm:$0xff] }
  0x8d   : > { %2428 = vmatmul.mubr.bf16.gmra.mxu0 %v5146_v22 }
  0x8e   : > { %2541 = vmatmul.mubr.bf16.gmra.mxu1 %v5148_v23  ;;  %2580 = vmatpush2.bf16.msra.mxu0 %v4284_v16  ;;  %v5220_v16 = vcombine.low %v415_v43, %v419_v48  ;;  %v4325_v43 = vld [vmem:[%s6335_s1 + $0x26c] ss:$16 sps:$4 sm:$0xff]   ;;  %v4320_v48 = vld [vmem:[%s6335_s1 + $0x68] ss:$16 sps:$4 sm:$0xff]  }
  0x8f   : > { %2693 = vmatpush2.bf16.msra.mxu1 %v4287_v17  ;;  %2581 = vmatprep.subr.bf16.mxu0 %v4292_v30  ;;  %v5222_v17 = vcombine.low %v416_v54, %v420_v56  ;;  %v4316_v30 = vld [vmem:[%s6335_s1 + $0x8c] ss:$16 sps:$4 sm:$0xff]   ;;  %v4323_v54 = vld [vmem:[%s6335_s1 + $0x268] ss:$16 sps:$4 sm:$0xff]   ;;  %v431_v56 = vld [vmem:[%s4780_s7 + $0xd0] sm:$0xff] }
  0x90   : > { %2694 = vmatprep.subr.bf16.mxu1 %v4295_v31  ;;  %2583 = vmatprep.mubr.bf16.mxu0 %v5158_v32  ;;  %v4319_v31 = vld [vmem:[%s6335_s1 + $0x28c] ss:$16 sps:$4 sm:$0xff]  }
  0x91   : > { %2696 = vmatprep.mubr.bf16.mxu1 %v5160_v33 }
  0x92   : > { %2582 = vmatpush2.bf16.msra.mxu0 %v4290_v36  ;;  %v5238_v36 = vcombine.high %v423_v10, %v427_v13 }
  0x93   : > { %2695 = vmatpush2.bf16.msra.mxu1 %v4293_v39  ;;  %2777 = vmatprep.subr.bf16.mxu0 %v4298_v40  ;;  %v5240_v39 = vcombine.high %v424_v20, %v428_v21  ;;  %v4314_v40 = vld [vmem:[%s6335_s1 + $0x88] ss:$16 sps:$4 sm:$0xff]  }
  0x94   : > { %2890 = vmatprep.subr.bf16.mxu1 %v4301_v41  ;;  %v4317_v41 = vld [vmem:[%s6335_s1 + $0x288] ss:$16 sps:$4 sm:$0xff]  }
  0x95   : > { %2584 = vmatmul.mubr.bf16.vlgmr.msra.gmra.mxu0 %v5183_v49 }
  0x96   : > { %2697 = vmatmul.mubr.bf16.vlgmr.msra.gmra.mxu1 %v5185_v52  ;;  %2778 = vmatpush1.bf16.msra.mxu0 %v4296_v42  ;;  %v4322_v42 = vld [vmem:[%s6335_s1 + $0x6c] ss:$16 sps:$4 sm:$0xff]  }
  0x97   : > { %2891 = vmatpush1.bf16.msra.mxu1 %v4299_v57  ;;  %2779 = vmatprep.subr.bf16.mxu0 %v4304_v58  ;;  %v5265_v57 = vcombine.low %v423_v10, %v427_v13  ;;  %v5267_v58 = vcombine.low %v424_v20, %v428_v21  ;;  %v4326_v13 = vld [vmem:[%s6335_s1 + $0x48] ss:$16 sps:$4 sm:$0xff]   ;;  %v4334_v21 = vld [vmem:[%s6335_s1 + $0x2c] ss:$16 sps:$4 sm:$0xff]  }
  0x98   : > { %2892 = vmatprep.subr.bf16.mxu1 %v4307_v59  ;;  %2593 = vmatprep.mubr.bf16.mxu0 %v5198_v0  ;;  %v435_v59 = vld [vmem:[%s4780_s7 + $0xf0] sm:$0xff]  ;;  %v4329_v20 = vld [vmem:[%s6335_s1 + $0x248] ss:$16 sps:$4 sm:$0xff]  }
  0x99   : > { %2706 = vmatprep.mubr.bf16.mxu1 %v5200_v1 }
  0x9a   : > { %2780 = vmatpush1.bf16.msra.mxu0 %v4302_v2  ;;  %v432_v2 = vld [vmem:[%s4780_s7 + $0xd8] sm:$0xff] }
  0x9b   : > { %2893 = vmatpush1.bf16.msra.mxu1 %v4305_v3  ;;  %2781 = vmatprep.subr.bf16.mxu0 %v4310_v8  ;;  %v436_v3 = vld [vmem:[%s4780_s7 + $0xf8] sm:$0xff] }
  0x9c   : > { %2894 = vmatprep.subr.bf16.mxu1 %v4313_v9  ;;  %v4328_v8 = vld [vmem:[%s6335_s1 + $0x4c] ss:$16 sps:$4 sm:$0xff]   ;;  %v5280_v10 = vcombine.high %v432_v2, %v436_v3 }
  0x9d   : > { %2594 = vmatmul.mubr.bf16.gmra.mxu0 %v5220_v16  ;;  %v4331_v9 = vld [vmem:[%s6335_s1 + $0x24c] ss:$16 sps:$4 sm:$0xff]  }
  0x9e   : > { %2707 = vmatmul.mubr.bf16.gmra.mxu1 %v5222_v17  ;;  %2782 = vmatpush1.bf16.msra.mxu0 %v4308_v26  ;;  %v5278_v26 = vcombine.high %v431_v56, %v435_v59  ;;  %6355 = vst [vmem:[#allocation5_spill] sm:$0xff] %v5280_v10 }
  0x9f   : > { %2895 = vmatpush1.bf16.msra.mxu1 %v4311_v27  ;;  %2783 = vmatprep.subr.bf16.mxu0 %v4316_v30  ;;  %v4337_v27 = vld [vmem:[%s6335_s1 + $0x22c] ss:$16 sps:$4 sm:$0xff]   ;;  %v4332_v30 = vld [vmem:[%s6335_s1 + $0x28] ss:$16 sps:$4 sm:$0xff]  }
  0xa0   : > { %2896 = vmatprep.subr.bf16.mxu1 %v4319_v31  ;;  %2603 = vmatprep.mubr.bf16.mxu0 %v5238_v36  ;;  %v4335_v31 = vld [vmem:[%s6335_s1 + $0x228] ss:$16 sps:$4 sm:$0xff]  }
  0xa1   : > { %2716 = vmatprep.mubr.bf16.mxu1 %v5240_v39 }
  0xa2   : > { %2784 = vmatpush1.bf16.msra.mxu0 %v4314_v40  ;;  %v439_v40 = vld [vmem:[%s4780_s7 + $0x110] sm:$0xff] }
  0xa3   : > { %2897 = vmatpush1.bf16.msra.mxu1 %v4317_v41  ;;  %2785 = vmatprep.subr.bf16.mxu0 %v4322_v42  ;;  %v443_v41 = vld [vmem:[%s4780_s7 + $0x130] sm:$0xff]  ;;  %v5306_v42 = vcombine.low %v431_v56, %v435_v59  ;;  %v4338_v59 = vld [vmem:[%s6335_s1 + $0x8] ss:$16 sps:$4 sm:$0xff]  }
  0xa4   : > { %2898 = vmatprep.subr.bf16.mxu1 %v4325_v43  ;;  %v5308_v43 = vcombine.low %v432_v2, %v436_v3  ;;  %v4341_v2 = vld [vmem:[%s6335_s1 + $0x208] ss:$16 sps:$4 sm:$0xff]   ;;  %v4346_v3 = vld [vmem:[%s6335_s1 + $0x1ec] ss:$16 sps:$4 sm:$0xff]  }
  0xa5   : > { %2604 = vmatmul.mubr.bf16.gmra.mxu0 %v5265_v57  ;;  %6356 = vst [vmem:[#allocation6_spill] sm:$0xff] %v5306_v42 }
  0xa6   : > { %2717 = vmatmul.mubr.bf16.gmra.mxu1 %v5267_v58  ;;  %2786 = vmatpush1.bf16.msra.mxu0 %v4320_v48  ;;  %6357 = vst [vmem:[#allocation7_spill] sm:$0xff] %v5308_v43  ;;  %v440_v48 = vld [vmem:[%s4780_s7 + $0x118] sm:$0xff] }
  0xa7   : > { %2899 = vmatpush1.bf16.msra.mxu1 %v4323_v54  ;;  %2787 = vmatprep.subr.bf16.mxu0 %v4328_v8  ;;  %v444_v54 = vld [vmem:[%s4780_s7 + $0x138] sm:$0xff] }
  0xa8   : > { %2900 = vmatprep.subr.bf16.mxu1 %v4331_v9  ;;  %2613 = vmatprep.mubr.bf16.mxu0 %v5278_v26  ;;  %v4340_v8 = vld [vmem:[%s6335_s1 + $0xc] ss:$16 sps:$4 sm:$0xff]   ;;  %v5320_v56 = vcombine.high %v440_v48, %v444_v54 }
  0xa9   : > { %2726 = vmatprep.mubr.bf16.mxu1 %v5280_v10  ;;  %v4343_v9 = vld [vmem:[%s6335_s1 + $0x20c] ss:$16 sps:$4 sm:$0xff]   ;;  %v5318_v10 = vcombine.high %v439_v40, %v443_v41 }
  0xaa   : > { %2788 = vmatpush1.bf16.msra.mxu0 %v4326_v13  ;;  %6359 = vst [vmem:[#allocation9_spill] sm:$0xff] %v5320_v56  ;;  %v4349_v13 = vld [vmem:[%s6335_s1 + $0x3ec] ss:$16 sps:$4 sm:$0xff]  }
  0xab   : > { %2901 = vmatpush1.bf16.msra.mxu1 %v4329_v20  ;;  %2789 = vmatprep.subr.bf16.mxu0 %v4334_v21  ;;  %6358 = vst [vmem:[#allocation8_spill] sm:$0xff] %v5318_v10  ;;  %v4344_v20 = vld [vmem:[%s6335_s1 + $0x1e8] ss:$16 sps:$4 sm:$0xff]  }
  0xac   : > { %2902 = vmatprep.subr.bf16.mxu1 %v4337_v27  ;;  %v4347_v21 = vld [vmem:[%s6335_s1 + $0x3e8] ss:$16 sps:$4 sm:$0xff]   ;;  %v447_v27 = vld [vmem:[%s4780_s7 + $0x150] sm:$0xff] }
  0xad   : > { %2614 = vmatmul.mubr.bf16.gmra.mxu0 %v5306_v42 }
  0xae   : > { %2727 = vmatmul.mubr.bf16.gmra.mxu1 %v5308_v43  ;;  %2790 = vmatpush1.bf16.msra.mxu0 %v4332_v30  ;;  %v451_v30 = vld [vmem:[%s4780_s7 + $0x170] sm:$0xff]  ;;  %v452_v43 = vld [vmem:[%s4780_s7 + $0x178] sm:$0xff] }
  0xaf   : > { %2903 = vmatpush1.bf16.msra.mxu1 %v4335_v31  ;;  %2791 = vmatprep.subr.bf16.mxu0 %v4340_v8  ;;  %v5346_v31 = vcombine.low %v439_v40, %v443_v41  ;;  %v5348_v8 = vcombine.low %v440_v48, %v444_v54  ;;  %v5358_v42 = vcombine.high %v447_v27, %v451_v30  ;;  %v4350_v41 = vld [vmem:[%s6335_s1 + $0x1c8] ss:$16 sps:$4 sm:$0xff]   ;;  %v4358_v54 = vld [vmem:[%s6335_s1 + $0x1ac] ss:$16 sps:$4 sm:$0xff]  }
  0xb0   : > { %2904 = vmatprep.subr.bf16.mxu1 %v4343_v9  ;;  %2623 = vmatprep.mubr.bf16.mxu0 %v5318_v10  ;;  %v448_v9 = vld [vmem:[%s4780_s7 + $0x158] sm:$0xff] }
  0xb1   : > { %2736 = vmatprep.mubr.bf16.mxu1 %v5320_v56  ;;  %6360 = vst [vmem:[#allocation10_spill] sm:$0xff] %v5346_v31  ;;  %6361 = vst [vmem:[#allocation11_spill] sm:$0xff] %v5348_v8  ;;  %v4352_v56 = vld [vmem:[%s6335_s1 + $0x1cc] ss:$16 sps:$4 sm:$0xff]   ;;  %v5360_v40 = vcombine.high %v448_v9, %v452_v43  ;;  %v4353_v48 = vld [vmem:[%s6335_s1 + $0x3c8] ss:$16 sps:$4 sm:$0xff]  }
  0xb2   : > { %2792 = vmatpush1.bf16.msra.mxu0 %v4338_v59  ;;  %v4355_v10 = vld [vmem:[%s6335_s1 + $0x3cc] ss:$16 sps:$4 sm:$0xff]   ;;  %6362 = vst [vmem:[#allocation12_spill] sm:$0xff] %v5358_v42 }
  0xb3   : > { %2905 = vmatpush1.bf16.msra.mxu1 %v4341_v2  ;;  %2793 = vmatprep.subr.bf16.mxu0 %v4346_v3  ;;  %6363 = vst [vmem:[#allocation13_spill] sm:$0xff] %v5360_v40  ;;  %v4361_v59 = vld [vmem:[%s6335_s1 + $0x3ac] ss:$16 sps:$4 sm:$0xff]   ;;  %v4356_v2 = vld [vmem:[%s6335_s1 + $0x1a8] ss:$16 sps:$4 sm:$0xff]  }
  0xb4   : > { %2906 = vmatprep.subr.bf16.mxu1 %v4349_v13  ;;  %v4359_v3 = vld [vmem:[%s6335_s1 + $0x3a8] ss:$16 sps:$4 sm:$0xff]   ;;  %v455_v13 = vld [vmem:[%s4780_s7 + $0x190] sm:$0xff] }
  0xb5   : > { %2624 = vmatmul.mubr.bf16.gmra.mxu0 %v5346_v31 }
  0xb6   : > { %2737 = vmatmul.mubr.bf16.gmra.mxu1 %v5348_v8  ;;  %2794 = vmatpush2.bf16.msra.mxu0 %v4344_v20  ;;  %v459_v20 = vld [vmem:[%s4780_s7 + $0x1b0] sm:$0xff]  ;;  %v460_v8 = vld [vmem:[%s4780_s7 + $0x1b8] sm:$0xff] }
  0xb7   : > { %2907 = vmatpush2.bf16.msra.mxu1 %v4347_v21  ;;  %2795 = vmatprep.subr.bf16.mxu0 %v4352_v56  ;;  %v5386_v56 = vcombine.low %v447_v27, %v451_v30  ;;  %v456_v21 = vld [vmem:[%s4780_s7 + $0x198] sm:$0xff]  ;;  %v5398_v31 = vcombine.high %v455_v13, %v459_v20 }
  0xb8   : > { %2908 = vmatprep.subr.bf16.mxu1 %v4355_v10  ;;  %2633 = vmatprep.mubr.bf16.mxu0 %v5358_v42  ;;  %v5388_v10 = vcombine.low %v448_v9, %v452_v43  ;;  %v4367_v42 = vld [vmem:[%s6335_s1 + $0x38c] ss:$16 sps:$4 sm:$0xff]   ;;  %v5400_v27 = vcombine.high %v456_v21, %v460_v8  ;;  %v4362_v43 = vld [vmem:[%s6335_s1 + $0x188] ss:$16 sps:$4 sm:$0xff]  }
  0xb9   : > { %2746 = vmatprep.mubr.bf16.mxu1 %v5360_v40  ;;  %6364 = vst [vmem:[#allocation14_spill] sm:$0xff] %v5386_v56  ;;  %v4364_v40 = vld [vmem:[%s6335_s1 + $0x18c] ss:$16 sps:$4 sm:$0xff]   ;;  %6366 = vst [vmem:[#allocation16_spill] sm:$0xff] %v5398_v31  ;;  %v4365_v30 = vld [vmem:[%s6335_s1 + $0x388] ss:$16 sps:$4 sm:$0xff]  }
  0xba   : > { %6365 = vst [vmem:[#allocation15_spill] sm:$0xff] %v5388_v10  ;;  %2796 = vmatpush2.bf16.msra.mxu0 %v4350_v41  ;;  %6367 = vst [vmem:[#allocation17_spill] sm:$0xff] %v5400_v27  ;;  %v4370_v9 = vld [vmem:[%s6335_s1 + $0x16c] ss:$16 sps:$4 sm:$0xff]  }
  0xbb   : > { %2909 = vmatpush2.bf16.msra.mxu1 %v4353_v48  ;;  %2797 = vmatprep.subr.bf16.mxu0 %v4358_v54  ;;  %v4373_v41 = vld [vmem:[%s6335_s1 + $0x36c] ss:$16 sps:$4 sm:$0xff]   ;;  %v4368_v48 = vld [vmem:[%s6335_s1 + $0x168] ss:$16 sps:$4 sm:$0xff]  }
  0xbc   : > { %2910 = vmatprep.subr.bf16.mxu1 %v4361_v59  ;;  %v4371_v54 = vld [vmem:[%s6335_s1 + $0x368] ss:$16 sps:$4 sm:$0xff]   ;;  %v463_v59 = vld [vmem:[%s4780_s7 + $0x1d0] sm:$0xff] }
  0xbd   : > { %2634 = vmatmul.mubr.bf16.gmra.mxu0 %v5386_v56 }
  0xbe   : > { %2747 = vmatmul.mubr.bf16.gmra.mxu1 %v5388_v10  ;;  %2798 = vmatpush2.bf16.msra.mxu0 %v4356_v2  ;;  %v467_v2 = vld [vmem:[%s4780_s7 + $0x1f0] sm:$0xff]  ;;  %v468_v10 = vld [vmem:[%s4780_s7 + $0x1f8] sm:$0xff] }
  0xbf   : > { %2911 = vmatpush2.bf16.msra.mxu1 %v4359_v3  ;;  %2799 = vmatprep.subr.bf16.mxu0 %v4364_v40  ;;  %v5426_v40 = vcombine.low %v455_v13, %v459_v20  ;;  %v464_v3 = vld [vmem:[%s4780_s7 + $0x1d8] sm:$0xff]  ;;  %v5438_v56 = vcombine.high %v463_v59, %v467_v2  ;;  %s4045_s7 = sshll.u32 %s4556_s15, 13  ;;  %s6289_s15 = scalar_lea.sflag [#allocation3], %s239_s6 }
  0xc0   : > { %2912 = vmatprep.subr.bf16.mxu1 %v4367_v42  ;;  %2643 = vmatprep.mubr.bf16.mxu0 %v5398_v31  ;;  %v5428_v42 = vcombine.low %v456_v21, %v460_v8  ;;  %v4379_v31 = vld [vmem:[%s6335_s1 + $0x34c] ss:$16 sps:$4 sm:$0xff]   ;;  %v5440_v13 = vcombine.high %v464_v3, %v468_v10  ;;  %v4374_v8 = vld [vmem:[%s6335_s1 + $0x148] ss:$16 sps:$4 sm:$0xff]   ;;  %s6280_s23 = scalar_lea.hbm %s6337_s3, %s4045_s7 }
  0xc1   : > { %2756 = vmatprep.mubr.bf16.mxu1 %v5400_v27  ;;  %v4376_v27 = vld [vmem:[%s6335_s1 + $0x14c] ss:$16 sps:$4 sm:$0xff]   ;;  %v4377_v20 = vld [vmem:[%s6335_s1 + $0x348] ss:$16 sps:$4 sm:$0xff]  }
  0xc2   : > { %2800 = vmatpush2.bf16.msra.mxu0 %v4362_v43  ;;  %v4382_v21 = vld [vmem:[%s6335_s1 + $0x12c] ss:$16 sps:$4 sm:$0xff]  }
  0xc3   : > { %2913 = vmatpush2.bf16.msra.mxu1 %v4365_v30  ;;  %2801 = vmatprep.subr.bf16.mxu0 %v4370_v9  ;;  %v4385_v43 = vld [vmem:[%s6335_s1 + $0x32c] ss:$16 sps:$4 sm:$0xff]   ;;  %v5458_v30 = vcombine.low %v463_v59, %v467_v2  ;;  %v5460_v9 = vcombine.low %v464_v3, %v468_v10  ;;  %v4392_v3 = vld [vmem:[%s6335_s1 + $0x4e8] ss:$16 sps:$4 sm:$0xff]  }
  0xc4   : > { %2914 = vmatprep.subr.bf16.mxu1 %v4373_v41  ;;  %v4380_v41 = vld [vmem:[%s6335_s1 + $0x128] ss:$16 sps:$4 sm:$0xff]   ;;  %v4391_v10 = vld [vmem:[%s6335_s1 + $0x30c] ss:$16 sps:$4 sm:$0xff]  }
  0xc5   : > { %2644 = vmatmul.mubr.bf16.gmra.mxu0 %v5426_v40  ;;  %v4394_v59 = vld [vmem:[%s6335_s1 + $0x4ec] ss:$16 sps:$4 sm:$0xff]  }
  0xc6   : > { %2757 = vmatmul.mubr.bf16.gmra.mxu1 %v5428_v42  ;;  %2802 = vmatpush2.bf16.msra.mxu0 %v4368_v48  ;;  %v4386_v48 = vld [vmem:[%s6335_s1 + $0x108] ss:$16 sps:$4 sm:$0xff]   ;;  %v4397_v2 = vld [vmem:[%s6335_s1 + $0x6ec] ss:$16 sps:$4 sm:$0xff]  }
  0xc7   : > { %2915 = vmatpush2.bf16.msra.mxu1 %v4371_v54  ;;  %2803 = vmatprep.subr.bf16.mxu0 %v4376_v27  ;;  %v4388_v27 = vld [vmem:[%s6335_s1 + $0x10c] ss:$16 sps:$4 sm:$0xff]   ;;  %v4389_v54 = vld [vmem:[%s6335_s1 + $0x308] ss:$16 sps:$4 sm:$0xff]  }
  0xc8   : > { %2916 = vmatprep.subr.bf16.mxu1 %v4379_v31  ;;  %2653 = vmatprep.mubr.bf16.mxu0 %v5438_v56  ;;  %v4383_v31 = vld [vmem:[%s6335_s1 + $0x328] ss:$16 sps:$4 sm:$0xff]  }
  0xc9   : > { %2766 = vmatprep.mubr.bf16.mxu1 %v5440_v13 }
  0xca   : > { %2804 = vmatpush2.bf16.msra.mxu0 %v4374_v8  ;;  %v4395_v8 = vld [vmem:[%s6335_s1 + $0x6e8] ss:$16 sps:$4 sm:$0xff]  }
  0xcb   : > { %2917 = vmatpush2.bf16.msra.mxu1 %v4377_v20  ;;  %2805 = vmatprep.subr.bf16.mxu0 %v4382_v21  ;;  %v4400_v20 = vld [vmem:[%s6335_s1 + $0x4cc] ss:$16 sps:$4 sm:$0xff]   ;;  %v4401_v21 = vld [vmem:[%s6335_s1 + $0x6c8] ss:$16 sps:$4 sm:$0xff]  }
  0xcc   : > { %2918 = vmatprep.subr.bf16.mxu1 %v4385_v43  ;;  %v4406_v43 = vld [vmem:[%s6335_s1 + $0x4ac] ss:$16 sps:$4 sm:$0xff]  }
  0xcd   : > { %2654 = vmatmul.mubr.bf16.gmra.mxu0 %v5458_v30 }
  0xce   : > { %2767 = vmatmul.mubr.bf16.gmra.mxu1 %v5460_v9  ;;  %2806 = vmatpush2.bf16.msra.mxu0 %v4380_v41  ;;  %v4407_v41 = vld [vmem:[%s6335_s1 + $0x6a8] ss:$16 sps:$4 sm:$0xff]  }
  0xcf   : > { %2919 = vmatpush2.bf16.msra.mxu1 %v4383_v31  ;;  %2807 = vmatprep.subr.bf16.mxu0 %v4388_v27  ;;  %v4412_v31 = vld [vmem:[%s6335_s1 + $0x48c] ss:$16 sps:$4 sm:$0xff]   ;;  %v4413_v27 = vld [vmem:[%s6335_s1 + $0x688] ss:$16 sps:$4 sm:$0xff]  }
  0xd0   : > { %2920 = vmatprep.subr.bf16.mxu1 %v4391_v10  ;;  %2809 = vmatprep.mubr.bf16.mxu0 %v4801_v53  ;;  %v4403_v53 = vld [vmem:[%s6335_s1 + $0x6cc] ss:$16 sps:$4 sm:$0xff]  }
  0xd1   : > { %2922 = vmatprep.mubr.bf16.mxu1 %v4806_v55  ;;  %v4398_v55 = vld [vmem:[%s6335_s1 + $0x4c8] ss:$16 sps:$4 sm:$0xff]   ;;  %v4418_v10 = vld [vmem:[%s6335_s1 + $0x46c] ss:$16 sps:$4 sm:$0xff]  }
  0xd2   : > { %2808 = vmatpush2.bf16.msra.mxu0 %v4386_v48  ;;  %v4419_v48 = vld [vmem:[%s6335_s1 + $0x668] ss:$16 sps:$4 sm:$0xff]  }
  0xd3   : > { %2921 = vmatpush2.bf16.msra.mxu1 %v4389_v54  ;;  %3003 = vmatprep.subr.bf16.mxu0 %v4394_v59  ;;  %v4424_v54 = vld [vmem:[%s6335_s1 + $0x44c] ss:$16 sps:$4 sm:$0xff]   ;;  %v4425_v59 = vld [vmem:[%s6335_s1 + $0x648] ss:$16 sps:$4 sm:$0xff]  }
  0xd4   : > { %3116 = vmatprep.subr.bf16.mxu1 %v4397_v2  ;;  %v4430_v2 = vld [vmem:[%s6335_s1 + $0x42c] ss:$16 sps:$4 sm:$0xff]  }
  0xd5   : > { %2810 = vmatmul.mubr.bf16.vlgmr.msra.gmra.mxu0 %v4865_v11  ;;  %v4409_v11 = vld [vmem:[%s6335_s1 + $0x6ac] ss:$16 sps:$4 sm:$0xff]  }
  0xd6   : > { %2923 = vmatmul.mubr.bf16.vlgmr.msra.gmra.mxu1 %v4867_v12  ;;  %3004 = vmatpush1.bf16.msra.mxu0 %v4392_v3  ;;  %v4404_v12 = vld [vmem:[%s6335_s1 + $0x4a8] ss:$16 sps:$4 sm:$0xff]  }
  0xd7   : > { %3117 = vmatpush1.bf16.msra.mxu1 %v4395_v8  ;;  %3005 = vmatprep.subr.bf16.mxu0 %v4400_v20  ;;  %v4431_v3 = vld [vmem:[%s6335_s1 + $0x628] ss:$16 sps:$4 sm:$0xff]   ;;  %v4436_v8 = vld [vmem:[%s6335_s1 + $0x40c] ss:$16 sps:$4 sm:$0xff]  }
  0xd8   : > { %3118 = vmatprep.subr.bf16.mxu1 %v4403_v53  ;;  %2819 = vmatprep.mubr.bf16.mxu0 %v4878_v18  ;;  %v4415_v18 = vld [vmem:[%s6335_s1 + $0x68c] ss:$16 sps:$4 sm:$0xff]   ;;  %v4437_v20 = vld [vmem:[%s6335_s1 + $0x608] ss:$16 sps:$4 sm:$0xff]  }
  0xd9   : > { %2932 = vmatprep.mubr.bf16.mxu1 %v4880_v19  ;;  %v4410_v19 = vld [vmem:[%s6335_s1 + $0x488] ss:$16 sps:$4 sm:$0xff]   ;;  %v4442_v53 = vld [vmem:[%s6335_s1 + $0x5ec] ss:$16 sps:$4 sm:$0xff]  }
  0xda   : > { %3006 = vmatpush1.bf16.msra.mxu0 %v4398_v55  ;;  %v4443_v55 = vld [vmem:[%s6335_s1 + $0x7e8] ss:$16 sps:$4 sm:$0xff]  }
  0xdb   : > { %3119 = vmatpush1.bf16.msra.mxu1 %v4401_v21  ;;  %3007 = vmatprep.subr.bf16.mxu0 %v4406_v43  ;;  %v4448_v21 = vld [vmem:[%s6335_s1 + $0x5cc] ss:$16 sps:$4 sm:$0xff]   ;;  %v4449_v43 = vld [vmem:[%s6335_s1 + $0x7c8] ss:$16 sps:$4 sm:$0xff]  }
  0xdc   : > { %3120 = vmatprep.subr.bf16.mxu1 %v4409_v11  ;;  %v4454_v11 = vld [vmem:[%s6335_s1 + $0x5ac] ss:$16 sps:$4 sm:$0xff]  }
  0xdd   : > { %2820 = vmatmul.mubr.bf16.gmra.mxu0 %v4906_v28  ;;  %v4421_v28 = vld [vmem:[%s6335_s1 + $0x66c] ss:$16 sps:$4 sm:$0xff]  }
  0xde   : > { %2933 = vmatmul.mubr.bf16.gmra.mxu1 %v4908_v29  ;;  %3008 = vmatpush1.bf16.msra.mxu0 %v4404_v12  ;;  %v4416_v29 = vld [vmem:[%s6335_s1 + $0x468] ss:$16 sps:$4 sm:$0xff]  }
  0xdf   : > { %3121 = vmatpush1.bf16.msra.mxu1 %v4407_v41  ;;  %3009 = vmatprep.subr.bf16.mxu0 %v4412_v31  ;;  %v4455_v12 = vld [vmem:[%s6335_s1 + $0x7a8] ss:$16 sps:$4 sm:$0xff]   ;;  %v4460_v41 = vld [vmem:[%s6335_s1 + $0x58c] ss:$16 sps:$4 sm:$0xff]  }
  0xe0   : > { %3122 = vmatprep.subr.bf16.mxu1 %v4415_v18  ;;  %2829 = vmatprep.mubr.bf16.mxu0 %v4918_v34  ;;  %v4427_v34 = vld [vmem:[%s6335_s1 + $0x64c] ss:$16 sps:$4 sm:$0xff]   ;;  %v4461_v31 = vld [vmem:[%s6335_s1 + $0x788] ss:$16 sps:$4 sm:$0xff]  }
  0xe1   : > { %2942 = vmatprep.mubr.bf16.mxu1 %v4920_v35  ;;  %v4422_v35 = vld [vmem:[%s6335_s1 + $0x448] ss:$16 sps:$4 sm:$0xff]   ;;  %v4466_v18 = vld [vmem:[%s6335_s1 + $0x56c] ss:$16 sps:$4 sm:$0xff]  }
  0xe2   : > { %3010 = vmatpush1.bf16.msra.mxu0 %v4410_v19  ;;  %v4467_v19 = vld [vmem:[%s6335_s1 + $0x768] ss:$16 sps:$4 sm:$0xff]  }
  0xe3   : > { %3123 = vmatpush1.bf16.msra.mxu1 %v4413_v27  ;;  %3011 = vmatprep.subr.bf16.mxu0 %v4418_v10  ;;  %v4472_v27 = vld [vmem:[%s6335_s1 + $0x54c] ss:$16 sps:$4 sm:$0xff]   ;;  %v4473_v10 = vld [vmem:[%s6335_s1 + $0x748] ss:$16 sps:$4 sm:$0xff]  }
  0xe4   : > { %3124 = vmatprep.subr.bf16.mxu1 %v4421_v28  ;;  %v4478_v28 = vld [vmem:[%s6335_s1 + $0x52c] ss:$16 sps:$4 sm:$0xff]  }
  0xe5   : > { %2830 = vmatmul.mubr.bf16.gmra.mxu0 %v4946_v44  ;;  %v4433_v44 = vld [vmem:[%s6335_s1 + $0x62c] ss:$16 sps:$4 sm:$0xff]  }
  0xe6   : > { %2943 = vmatmul.mubr.bf16.gmra.mxu1 %v4948_v45  ;;  %3012 = vmatpush1.bf16.msra.mxu0 %v4416_v29  ;;  %v4428_v45 = vld [vmem:[%s6335_s1 + $0x428] ss:$16 sps:$4 sm:$0xff]  }
  0xe7   : > { %3125 = vmatpush1.bf16.msra.mxu1 %v4419_v48  ;;  %3013 = vmatprep.subr.bf16.mxu0 %v4424_v54  ;;  %v4479_v29 = vld [vmem:[%s6335_s1 + $0x728] ss:$16 sps:$4 sm:$0xff]   ;;  %v4484_v48 = vld [vmem:[%s6335_s1 + $0x50c] ss:$16 sps:$4 sm:$0xff]  }
  0xe8   : > { %3126 = vmatprep.subr.bf16.mxu1 %v4427_v34  ;;  %2839 = vmatprep.mubr.bf16.mxu0 %v4958_v50  ;;  %v4439_v50 = vld [vmem:[%s6335_s1 + $0x60c] ss:$16 sps:$4 sm:$0xff]   ;;  %v4485_v54 = vld [vmem:[%s6335_s1 + $0x708] ss:$16 sps:$4 sm:$0xff]  }
  0xe9   : > { %2952 = vmatprep.mubr.bf16.mxu1 %v4960_v51  ;;  %v4434_v51 = vld [vmem:[%s6335_s1 + $0x408] ss:$16 sps:$4 sm:$0xff]  }
  0xea   : > { %3014 = vmatpush1.bf16.msra.mxu0 %v4422_v35 }
  0xeb   : > { %3127 = vmatpush1.bf16.msra.mxu1 %v4425_v59  ;;  %3015 = vmatprep.subr.bf16.mxu0 %v4430_v2 }
  0xec   : > { %3128 = vmatprep.subr.bf16.mxu1 %v4433_v44 }
  0xed   : > { %2840 = vmatmul.mubr.bf16.gmra.mxu0 %v4983_v61  ;;  %v4445_v61 = vld [vmem:[%s6335_s1 + $0x7ec] ss:$16 sps:$4 sm:$0xff]  }
  0xee   : > { %2953 = vmatmul.mubr.bf16.gmra.mxu1 %v4985_v62  ;;  %3016 = vmatpush1.bf16.msra.mxu0 %v4428_v45  ;;  %v4440_v62 = vld [vmem:[%s6335_s1 + $0x5e8] ss:$16 sps:$4 sm:$0xff]  }
  0xef   : > { %3129 = vmatpush1.bf16.msra.mxu1 %v4431_v3  ;;  %3017 = vmatprep.subr.bf16.mxu0 %v4436_v8 }
  0xf0   : > { %3130 = vmatprep.subr.bf16.mxu1 %v4439_v50  ;;  %2849 = vmatprep.mubr.bf16.mxu0 %v4998_v4  ;;  %v4451_v4 = vld [vmem:[%s6335_s1 + $0x7cc] ss:$16 sps:$4 sm:$0xff]  }
  0xf1   : > { %2962 = vmatprep.mubr.bf16.mxu1 %v5000_v5  ;;  %v4446_v5 = vld [vmem:[%s6335_s1 + $0x5c8] ss:$16 sps:$4 sm:$0xff]  }
  0xf2   : > { %3018 = vmatpush1.bf16.msra.mxu0 %v4434_v51 }
  0xf3   : > { %3131 = vmatpush1.bf16.msra.mxu1 %v4437_v20  ;;  %3019 = vmatprep.subr.bf16.mxu0 %v4442_v53 }
  0xf4   : > { %3132 = vmatprep.subr.bf16.mxu1 %v4445_v61 }
  0xf5   : > { %2850 = vmatmul.mubr.bf16.gmra.mxu0 %v5020_v14  ;;  %v4457_v14 = vld [vmem:[%s6335_s1 + $0x7ac] ss:$16 sps:$4 sm:$0xff]  }
  0xf6   : > { %2963 = vmatmul.mubr.bf16.gmra.mxu1 %v5022_v15  ;;  %3020 = vmatpush2.bf16.msra.mxu0 %v4440_v62  ;;  %v4452_v15 = vld [vmem:[%s6335_s1 + $0x5a8] ss:$16 sps:$4 sm:$0xff]  }
  0xf7   : > { %3133 = vmatpush2.bf16.msra.mxu1 %v4443_v55  ;;  %3021 = vmatprep.subr.bf16.mxu0 %v4448_v21  ;;  %v6371_v55 = vld [vmem:[#allocation8_spill] sm:$0xff]  ;;  %v6372_v21 = vld [vmem:[#allocation9_spill] sm:$0xff] }
  0xf8   : > { %3134 = vmatprep.subr.bf16.mxu1 %v4451_v4  ;;  %2859 = vmatprep.mubr.bf16.mxu0 %v5038_v24  ;;  %v4463_v24 = vld [vmem:[%s6335_s1 + $0x78c] ss:$16 sps:$4 sm:$0xff]  }
  0xf9   : > { %2972 = vmatprep.mubr.bf16.mxu1 %v5040_v25  ;;  %v4458_v25 = vld [vmem:[%s6335_s1 + $0x588] ss:$16 sps:$4 sm:$0xff]  }
  0xfa   : > { %3022 = vmatpush2.bf16.msra.mxu0 %v4446_v5 }
  0xfb   : > { %3135 = vmatpush2.bf16.msra.mxu1 %v4449_v43  ;;  %3023 = vmatprep.subr.bf16.mxu0 %v4454_v11 }
  0xfc   : > { %3136 = vmatprep.subr.bf16.mxu1 %v4457_v14 }
  0xfd   : > { %2860 = vmatmul.mubr.bf16.gmra.mxu0 %v5065_v37  ;;  %v4469_v37 = vld [vmem:[%s6335_s1 + $0x76c] ss:$16 sps:$4 sm:$0xff]  }
  0xfe   : > { %2973 = vmatmul.mubr.bf16.gmra.mxu1 %v5067_v38  ;;  %3024 = vmatpush2.bf16.msra.mxu0 %v4452_v15  ;;  %v4464_v38 = vld [vmem:[%s6335_s1 + $0x568] ss:$16 sps:$4 sm:$0xff]  }
  0xff   : > { %3137 = vmatpush2.bf16.msra.mxu1 %v4455_v12  ;;  %3025 = vmatprep.subr.bf16.mxu0 %v4460_v41 }
 0x100   : > { %3138 = vmatprep.subr.bf16.mxu1 %v4463_v24  ;;  %2869 = vmatprep.mubr.bf16.mxu0 %v5078_v46  ;;  %v4475_v46 = vld [vmem:[%s6335_s1 + $0x74c] ss:$16 sps:$4 sm:$0xff]  }
 0x101   : > { %2982 = vmatprep.mubr.bf16.mxu1 %v5080_v47  ;;  %v4470_v47 = vld [vmem:[%s6335_s1 + $0x548] ss:$16 sps:$4 sm:$0xff]  }
 0x102   : > { %3026 = vmatpush2.bf16.msra.mxu0 %v4458_v25  ;;  %v6373_v24 = vld [vmem:[#allocation10_spill] sm:$0xff]  ;;  %v6374_v25 = vld [vmem:[#allocation11_spill] sm:$0xff] }
 0x103   : > { %3139 = vmatpush2.bf16.msra.mxu1 %v4461_v31  ;;  %3027 = vmatprep.subr.bf16.mxu0 %v4466_v18  ;;  %v6375_v31 = vld [vmem:[#allocation12_spill] sm:$0xff]  ;;  %v6376_v18 = vld [vmem:[#allocation13_spill] sm:$0xff] }
 0x104   : > { %3140 = vmatprep.subr.bf16.mxu1 %v4469_v37 }
 0x105   : > { %2870 = vmatmul.mubr.bf16.gmra.mxu0 %v5106_v60  ;;  %v4481_v60 = vld [vmem:[%s6335_s1 + $0x72c] ss:$16 sps:$4 sm:$0xff]  }
 0x106   : > { %2983 = vmatmul.mubr.bf16.gmra.mxu1 %v5108_v63  ;;  %3028 = vmatpush2.bf16.msra.mxu0 %v4464_v38  ;;  %v4476_v63 = vld [vmem:[%s6335_s1 + $0x528] ss:$16 sps:$4 sm:$0xff]  }
 0x107   : > { %3141 = vmatpush2.bf16.msra.mxu1 %v4467_v19  ;;  %3029 = vmatprep.subr.bf16.mxu0 %v4472_v27 }
 0x108   : > { %3142 = vmatprep.subr.bf16.mxu1 %v4475_v46  ;;  %2879 = vmatprep.mubr.bf16.mxu0 %v5118_v6  ;;  %v4487_v6 = vld [vmem:[%s6335_s1 + $0x70c] ss:$16 sps:$4 sm:$0xff]  }
 0x109   : > { %2992 = vmatprep.mubr.bf16.mxu1 %v5120_v7  ;;  %v4482_v7 = vld [vmem:[%s6335_s1 + $0x508] ss:$16 sps:$4 sm:$0xff]  }
 0x10a   : > { %3030 = vmatpush2.bf16.msra.mxu0 %v4470_v47 }
 0x10b   : > { %3143 = vmatpush2.bf16.msra.mxu1 %v4473_v10  ;;  %3031 = vmatprep.subr.bf16.mxu0 %v4478_v28 }
 0x10c   : > { %3144 = vmatprep.subr.bf16.mxu1 %v4481_v60  ;;  %v6377_v60 = vld [vmem:[#allocation14_spill] sm:$0xff] }
 0x10d   : > { %2880 = vmatmul.mubr.bf16.gmra.mxu0 %v5146_v22 }
 0x10e   : > { %2993 = vmatmul.mubr.bf16.gmra.mxu1 %v5148_v23  ;;  %3032 = vmatpush2.bf16.msra.mxu0 %v4476_v63  ;;  %v6378_v63 = vld [vmem:[#allocation15_spill] sm:$0xff] }
 0x10f   : > { %3145 = vmatpush2.bf16.msra.mxu1 %v4479_v29  ;;  %3033 = vmatprep.subr.bf16.mxu0 %v4484_v48  ;;  %v6379_v29 = vld [vmem:[#allocation16_spill] sm:$0xff]  ;;  %v6380_v48 = vld [vmem:[#allocation17_spill] sm:$0xff] }
 0x110   : > { %3146 = vmatprep.subr.bf16.mxu1 %v4487_v6  ;;  %3035 = vmatprep.mubr.bf16.mxu0 %v5158_v32 }
 0x111   : > { %3148 = vmatprep.mubr.bf16.mxu1 %v5160_v33 }
 0x112   : > { %3034 = vmatpush2.bf16.msra.mxu0 %v4482_v7 }
 0x113   : > { %3147 = vmatpush2.bf16.msra.mxu1 %v4485_v54 }
 0x115   : > { %v5708_v22 = vpop.f32.mrf.mxu0  ;;  %3036 = vmatmul.mubr.bf16.vlgmr.msra.gmra.mxu0 %v5183_v49 }
 0x116   : > { %v5710_v23 = vpop.f32.mrf.mxu1  ;;  %3149 = vmatmul.mubr.bf16.vlgmr.msra.gmra.mxu1 %v5185_v52  ;;  %3045 = vmatprep.mubr.bf16.mxu0 %v5198_v0 }
 0x117   : > { %3158 = vmatprep.mubr.bf16.mxu1 %v5200_v1  ;;  %v5716_v34 = vpop.f32.mrf.mxu0 }
 0x118   : > { %v5718_v35 = vpop.f32.mrf.mxu1 }
 0x119   : > { %v5720_v32 = vpop.f32.mrf.mxu0 }
 0x11a   : > { %v5722_v33 = vpop.f32.mrf.mxu1 }
 0x11b   : > { %v5724_v59 = vpop.f32.mrf.mxu0 }
 0x11c   : > { %v5726_v2 = vpop.f32.mrf.mxu1 }
 0x11d   : > { %v5728_v44 = vpop.f32.mrf.mxu0  ;;  %3046 = vmatmul.mubr.bf16.gmra.mxu0 %v5220_v16 }
 0x11e   : > { %v5730_v49 = vpop.f32.mrf.mxu1  ;;  %3159 = vmatmul.mubr.bf16.gmra.mxu1 %v5222_v17  ;;  %3055 = vmatprep.mubr.bf16.mxu0 %v5238_v36  ;;  %v6368_v17 = vld [vmem:[#allocation5_spill] sm:$0xff] }
 0x11f   : > { %3168 = vmatprep.mubr.bf16.mxu1 %v5240_v39  ;;  %v5736_v52 = vpop.f32.mrf.mxu0 }
 0x120   : > { %v5738_v0 = vpop.f32.mrf.mxu1 }
 0x121   : > { %v5740_v1 = vpop.f32.mrf.mxu0 }
 0x122   : > { %v5742_v45 = vpop.f32.mrf.mxu1 }
 0x123   : > { %v5744_v3 = vpop.f32.mrf.mxu0 }
 0x124   : > { %v5746_v8 = vpop.f32.mrf.mxu1 }
 0x125   : > { %v5748_v50 = vpop.f32.mrf.mxu0  ;;  %3056 = vmatmul.mubr.bf16.gmra.mxu0 %v5265_v57 }
 0x126   : > { %v5750_v16 = vpop.f32.mrf.mxu1  ;;  %3169 = vmatmul.mubr.bf16.gmra.mxu1 %v5267_v58  ;;  %3065 = vmatprep.mubr.bf16.mxu0 %v5278_v26  ;;  %v6369_v58 = vld [vmem:[#allocation6_spill] sm:$0xff]  ;;  %v6370_v26 = vld [vmem:[#allocation7_spill] sm:$0xff] }
 0x127   : > { %3178 = vmatprep.mubr.bf16.mxu1 %v6368_v17  ;;  %v5756_v36 = vpop.f32.mrf.mxu0 }
 0x128   : > { %v5758_v39 = vpop.f32.mrf.mxu1 }
 0x129   : > { %v5760_v51 = vpop.f32.mrf.mxu0 }
 0x12a   : > { %v5762_v20 = vpop.f32.mrf.mxu1 }
 0x12b   : > { %v5764_v53 = vpop.f32.mrf.mxu0 }
 0x12c   : > { %v5766_v61 = vpop.f32.mrf.mxu1 }
 0x12d   : > { %v5768_v62 = vpop.f32.mrf.mxu0  ;;  %3066 = vmatmul.mubr.bf16.gmra.mxu0 %v6369_v58 }
 0x12e   : > { %v5770_v57 = vpop.f32.mrf.mxu1  ;;  %3179 = vmatmul.mubr.bf16.gmra.mxu1 %v6370_v26  ;;  %3075 = vmatprep.mubr.bf16.mxu0 %v6371_v55 }
 0x12f   : > { %3188 = vmatprep.mubr.bf16.mxu1 %v6372_v21  ;;  %v5776_v4 = vpop.f32.mrf.mxu0 }
 0x130   : > { %v5778_v5 = vpop.f32.mrf.mxu1 }
 0x131   : > { %v5780_v43 = vpop.f32.mrf.mxu0 }
 0x132   : > { %v5782_v11 = vpop.f32.mrf.mxu1 }
 0x133   : > { %v5784_v14 = vpop.f32.mrf.mxu0 }
 0x134   : > { %v5786_v15 = vpop.f32.mrf.mxu1 }
 0x135   : > { %v5788_v12 = vpop.f32.mrf.mxu0  ;;  %3076 = vmatmul.mubr.bf16.gmra.mxu0 %v6373_v24 }
 0x136   : > { %v5790_v41 = vpop.f32.mrf.mxu1  ;;  %3189 = vmatmul.mubr.bf16.gmra.mxu1 %v6374_v25  ;;  %3085 = vmatprep.mubr.bf16.mxu0 %v6375_v31 }
 0x137   : > { %3198 = vmatprep.mubr.bf16.mxu1 %v6376_v18  ;;  %v5796_v37 = vpop.f32.mrf.mxu0 }
 0x138   : > { %v5798_v38 = vpop.f32.mrf.mxu1 }
 0x139   : > { %v5800_v19 = vpop.f32.mrf.mxu0 }
 0x13a   : > { %v5802_v27 = vpop.f32.mrf.mxu1 }
 0x13b   : > { %v5804_v46 = vpop.f32.mrf.mxu0 }
 0x13c   : > { %v5806_v47 = vpop.f32.mrf.mxu1 }
 0x13d   : > { %v5808_v10 = vpop.f32.mrf.mxu0  ;;  %3086 = vmatmul.mubr.bf16.gmra.mxu0 %v6377_v60 }
 0x13e   : > { %v5810_v28 = vpop.f32.mrf.mxu1  ;;  %3199 = vmatmul.mubr.bf16.gmra.mxu1 %v6378_v63  ;;  %3095 = vmatprep.mubr.bf16.mxu0 %v6379_v29 }
 0x13f   : > { %3208 = vmatprep.mubr.bf16.mxu1 %v6380_v48  ;;  %v5816_v6 = vpop.f32.mrf.mxu0 }
 0x140   : > { %v5818_v7 = vpop.f32.mrf.mxu1 }
 0x141   : > { %v5820_v54 = vpop.f32.mrf.mxu0 }
 0x142   : > { %v5822_v17 = vpop.f32.mrf.mxu1 }
 0x143   : > { %v5824_v58 = vpop.f32.mrf.mxu0 }
 0x144   : > { %v5826_v26 = vpop.f32.mrf.mxu1 }
 0x145   : > { %v5828_v55 = vpop.f32.mrf.mxu0  ;;  %3096 = vmatmul.mubr.bf16.gmra.mxu0 %v5426_v40  ;;  %v3426_v40 = vlaneseq }
 0x146   : > { %v5830_v21 = vpop.f32.mrf.mxu1  ;;  %3209 = vmatmul.mubr.bf16.gmra.mxu1 %v5428_v42  ;;  %3105 = vmatprep.mubr.bf16.mxu0 %v5438_v56 }
 0x147   : > { %6381 = vst [vmem:[#allocation5_spill] sm:$0xff] %v5830_v21  ;;  %3218 = vmatprep.mubr.bf16.mxu1 %v5440_v13  ;;  %v5836_v24 = vpop.f32.mrf.mxu0  ;;  %v5858_v48 = vshrl.u32 %v3426_v40, 7  ;;  %v5875_v40 = vld [vmem:[%s6336_s2] sm:$0xf] }
 0x148   : > { %6382 = vst [vmem:[#allocation6_spill] sm:$0xff] %v5836_v24  ;;  %v5838_v25 = vpop.f32.mrf.mxu1 }
 0x149   : > { %6383 = vst [vmem:[#allocation7_spill] sm:$0xff] %v5838_v25  ;;  %v5840_v31 = vpop.f32.mrf.mxu0  ;;  %6392 = vst [vmem:[#allocation16_spill] sm:$0xff] %v5858_v48 }
 0x14a   : > { %6384 = vst [vmem:[#allocation8_spill] sm:$0xff] %v5840_v31  ;;  %v5842_v18 = vpop.f32.mrf.mxu1 }
 0x14b   : > { %6385 = vst [vmem:[#allocation9_spill] sm:$0xff] %v5842_v18  ;;  %v5844_v60 = vpop.f32.mrf.mxu0 }
 0x14c   : > { %6386 = vst [vmem:[#allocation10_spill] sm:$0xff] %v5844_v60  ;;  %v5846_v63 = vpop.f32.mrf.mxu1 }
 0x14d   : > { %6387 = vst [vmem:[#allocation11_spill] sm:$0xff] %v5846_v63  ;;  %v5848_v29 = vpop.f32.mrf.mxu0  ;;  %3106 = vmatmul.mubr.bf16.gmra.mxu0 %v5458_v30  ;;  %v2473_v30 = vadd.f32 %v5710_v23, %v5708_v22  ;;  %v2477_v22 = vadd.f32 %v5722_v33, %v5720_v32  ;;  %v2483_v32 = vadd.f32 %v5730_v49, %v5728_v44 }
 0x14e   : > { %6388 = vst [vmem:[#allocation12_spill] sm:$0xff] %v5848_v29  ;;  %v5850_v42 = vpop.f32.mrf.mxu1  ;;  %3219 = vmatmul.mubr.bf16.gmra.mxu1 %v5460_v9  ;;  %v3428_v9 = vsub.s32 0, %v5858_v48  ;;  %v2487_v49 = vadd.f32 %v5742_v45, %v5740_v1  ;;  %v2493_v1 = vadd.f32 %v5750_v16, %v5748_v50  ;;  %v2497_v50 = vadd.f32 %v5762_v20, %v5760_v51 }
 0x14f   : > { %6389 = vst [vmem:[#allocation13_spill] sm:$0xff] %v5850_v42  ;;  %v5854_v56 = vpop.f32.mrf.mxu0  ;;  %v2503_v51 = vadd.f32 %v5770_v57, %v5768_v62  ;;  %v2507_v62 = vadd.f32 %v5782_v11, %v5780_v43  ;;  %v2513_v43 = vadd.f32 %v5790_v41, %v5788_v12  ;;  %v2517_v12 = vadd.f32 %v5802_v27, %v5800_v19 }
 0x150   : > { %6390 = vst [vmem:[#allocation14_spill] sm:$0xff] %v5854_v56  ;;  %v5856_v13 = vpop.f32.mrf.mxu1  ;;  %v5885_v31 = vrot.slane %v5875_v40, %v3428_v9  ;;  %v2523_v19 = vadd.f32 %v5810_v28, %v5808_v10  ;;  %v2527_v10 = vadd.f32 %v5822_v17, %v5820_v54  ;;  %v6397_v54 = vld [vmem:[#allocation5_spill] sm:$0xff] }
 0x151   : > { %6391 = vst [vmem:[#allocation15_spill] sm:$0xff] %v5856_v13  ;;  %v5860_v18 = vpop.f32.mrf.mxu0  ;;  %v2533_v17 = vadd.f32 %v6397_v54, %v5828_v55  ;;  %v6400_v55 = vld [vmem:[#allocation8_spill] sm:$0xff] }
 0x152   : > { %6393 = vst [vmem:[#allocation17_spill] sm:$0xff] %v5860_v18  ;;  %v5862_v63 = vpop.f32.mrf.mxu1  ;;  %v3432_v18 = vsub.s32 1, %v5858_v48 }
 0x153   : > { %6394 = vst [vmem:[#allocation18_spill] sm:$0xff] %v5862_v63  ;;  %v5864_v60 = vpop.f32.mrf.mxu0 }
 0x154   : > { %6395 = vst [vmem:[#allocation19_spill] sm:$0xff] %v5864_v60  ;;  %v5866_v29 = vpop.f32.mrf.mxu1  ;;  %v2475_v60 = vadd.f32 %v5718_v35, %v5716_v34  ;;  %v5888_v24 = vrot.slane %v5875_v40, %v3432_v18  ;;  %v2479_v34 = vadd.f32 %v5726_v2, %v5724_v59  ;;  %v2485_v18 = vadd.f32 %v5738_v0, %v5736_v52 }
 0x155   : > { %6396 = vst [vmem:[#allocation20_spill] sm:$0xff] %v5866_v29  ;;  %v2585_v42 = vpop.f32.mrf.mxu0 }
 0x156   : > { %v2698_v56 = vpop.f32.mrf.mxu1  ;;  %v2586_v63 = vadd.f32 %v2585_v42, %v2473_v30 }
 0x157   : > { %v2587_v29 = vpop.f32.mrf.mxu0 }
 0x158   : > { %v2700_v13 = vpop.f32.mrf.mxu1  ;;  %v2699_v23 = vadd.f32 %v2698_v56, %v2586_v63  ;;  %v2588_v25 = vadd.f32 %v2587_v29, %v2475_v60 }
 0x159   : > { %v2589_v48 = vpop.f32.mrf.mxu0 }
 0x15a   : > { %v2702_v21 = vpop.f32.mrf.mxu1  ;;  %v2701_v35 = vadd.f32 %v2700_v13, %v2588_v25  ;;  %v2590_v42 = vadd.f32 %v2589_v48, %v2477_v22  ;;  %v3446_v63 = vadd.f32 %v5885_v31, %v2699_v23  ;;  %v2489_v48 = vadd.f32 %v5746_v8, %v5744_v3 }
 0x15b   : > { %v2591_v33 = vpop.f32.mrf.mxu0  ;;  %v2495_v3 = vadd.f32 %v5758_v39, %v5756_v36  ;;  %v2499_v36 = vadd.f32 %v5766_v61, %v5764_v53  ;;  %v2505_v53 = vadd.f32 %v5778_v5, %v5776_v4  ;;  %v2509_v4 = vadd.f32 %v5786_v15, %v5784_v14 }
 0x15c   : > { %v2704_v30 = vpop.f32.mrf.mxu1  ;;  %v2703_v56 = vadd.f32 %v2702_v21, %v2590_v42  ;;  %v2592_v9 = vadd.f32 %v2591_v33, %v2479_v34  ;;  %3510 = vst [vmem:[%s5897_s11] sm:$0xff] %v3446_v63  ;;  %v3447_v59 = vadd.f32 %v5888_v24, %v2701_v35  ;;  %v2515_v14 = vadd.f32 %v5798_v38, %v5796_v37 }
 0x15d   : > { %v2595_v60 = vpop.f32.mrf.mxu0  ;;  %v2519_v37 = vadd.f32 %v5806_v47, %v5804_v46  ;;  %v2525_v46 = vadd.f32 %v5818_v7, %v5816_v6  ;;  %v2529_v6 = vadd.f32 %v5826_v26, %v5824_v58  ;;  %v6398_v58 = vld [vmem:[#allocation6_spill] sm:$0xff]  ;;  %v6399_v26 = vld [vmem:[#allocation7_spill] sm:$0xff] }
 0x15e   : > { %v2708_v29 = vpop.f32.mrf.mxu1  ;;  %v2705_v2 = vadd.f32 %v2704_v30, %v2592_v9  ;;  %v2596_v44 = vadd.f32 %v2595_v60, %v2483_v32  ;;  %3511 = vst [vmem:[%s5897_s11 + $0x8] sm:$0xff] %v3447_v59  ;;  %v3450_v52 = vadd.f32 %v5885_v31, %v2703_v56 }
 0x15f   : > { %v2597_v21 = vpop.f32.mrf.mxu0 }
 0x160   : > { %v2710_v25 = vpop.f32.mrf.mxu1  ;;  %v2709_v0 = vadd.f32 %v2708_v29, %v2596_v44  ;;  %v2598_v13 = vadd.f32 %v2597_v21, %v2485_v18  ;;  %3514 = vst [vmem:[%s5897_s11 + $0x20] sm:$0xff] %v3450_v52  ;;  %v3451_v34 = vadd.f32 %v5888_v24, %v2705_v2 }
 0x161   : > { %v2599_v22 = vpop.f32.mrf.mxu0 }
 0x162   : > { %v2712_v23 = vpop.f32.mrf.mxu1  ;;  %v2711_v35 = vadd.f32 %v2710_v25, %v2598_v13  ;;  %v2600_v42 = vadd.f32 %v2599_v22, %v2487_v49  ;;  %3515 = vst [vmem:[%s5897_s11 + $0x28] sm:$0xff] %v3451_v34  ;;  %v3454_v33 = vadd.f32 %v5885_v31, %v2709_v0 }
 0x163   : > { %v2601_v45 = vpop.f32.mrf.mxu0 }
 0x164   : > { %v2714_v32 = vpop.f32.mrf.mxu1  ;;  %v2713_v30 = vadd.f32 %v2712_v23, %v2600_v42  ;;  %v2602_v63 = vadd.f32 %v2601_v45, %v2489_v48  ;;  %3518 = vst [vmem:[%s5897_s11 + $0x40] sm:$0xff] %v3454_v33  ;;  %v3455_v9 = vadd.f32 %v5888_v24, %v2711_v35 }
 0x165   : > { %v2605_v8 = vpop.f32.mrf.mxu0 }
 0x166   : > { %v2718_v56 = vpop.f32.mrf.mxu1  ;;  %v2715_v18 = vadd.f32 %v2714_v32, %v2602_v63  ;;  %v2606_v60 = vadd.f32 %v2605_v8, %v2493_v1  ;;  %3519 = vst [vmem:[%s5897_s11 + $0x48] sm:$0xff] %v3455_v9  ;;  %v3458_v59 = vadd.f32 %v5885_v31, %v2713_v30 }
 0x167   : > { %v2607_v16 = vpop.f32.mrf.mxu0 }
 0x168   : > { %v2720_v29 = vpop.f32.mrf.mxu1  ;;  %v2719_v2 = vadd.f32 %v2718_v56, %v2606_v60  ;;  %v2608_v44 = vadd.f32 %v2607_v16, %v2495_v3  ;;  %3522 = vst [vmem:[%s5897_s11 + $0x60] sm:$0xff] %v3458_v59  ;;  %v3459_v21 = vadd.f32 %v5888_v24, %v2715_v18 }
 0x169   : > { %v2609_v39 = vpop.f32.mrf.mxu0 }
 0x16a   : > { %v2722_v49 = vpop.f32.mrf.mxu1  ;;  %v2721_v25 = vadd.f32 %v2720_v29, %v2608_v44  ;;  %v2610_v52 = vadd.f32 %v2609_v39, %v2497_v50  ;;  %3523 = vst [vmem:[%s5897_s11 + $0x68] sm:$0xff] %v3459_v21  ;;  %v3462_v13 = vadd.f32 %v5885_v31, %v2719_v2 }
 0x16b   : > { %v2611_v20 = vpop.f32.mrf.mxu0 }
 0x16c   : > { %v2724_v0 = vpop.f32.mrf.mxu1  ;;  %v2723_v48 = vadd.f32 %v2722_v49, %v2610_v52  ;;  %v2612_v22 = vadd.f32 %v2611_v20, %v2499_v36  ;;  %3526 = vst [vmem:[%s5897_s11 + $0x80] sm:$0xff] %v3462_v13  ;;  %v3463_v34 = vadd.f32 %v5888_v24, %v2721_v25 }
 0x16d   : > { %v2615_v61 = vpop.f32.mrf.mxu0 }
 0x16e   : > { %v2728_v23 = vpop.f32.mrf.mxu1  ;;  %v2725_v35 = vadd.f32 %v2724_v0, %v2612_v22  ;;  %v2616_v42 = vadd.f32 %v2615_v61, %v2503_v51  ;;  %3527 = vst [vmem:[%s5897_s11 + $0x88] sm:$0xff] %v3463_v34  ;;  %v3466_v45 = vadd.f32 %v5885_v31, %v2723_v48 }
 0x16f   : > { %v2617_v57 = vpop.f32.mrf.mxu0 }
 0x170   : > { %v2730_v1 = vpop.f32.mrf.mxu1  ;;  %v2729_v32 = vadd.f32 %v2728_v23, %v2616_v42  ;;  %v2618_v33 = vadd.f32 %v2617_v57, %v2505_v53  ;;  %3530 = vst [vmem:[%s5897_s11 + $0xa0] sm:$0xff] %v3466_v45  ;;  %v3467_v63 = vadd.f32 %v5888_v24, %v2725_v35 }
 0x171   : > { %v2619_v5 = vpop.f32.mrf.mxu0 }
 0x172   : > { %v2732_v30 = vpop.f32.mrf.mxu1  ;;  %v2731_v3 = vadd.f32 %v2730_v1, %v2618_v33  ;;  %v2620_v8 = vadd.f32 %v2619_v5, %v2507_v62  ;;  %3531 = vst [vmem:[%s5897_s11 + $0xa8] sm:$0xff] %v3467_v63  ;;  %v3470_v9 = vadd.f32 %v5885_v31, %v2729_v32  ;;  %v2535_v63 = vadd.f32 %v6399_v26, %v6398_v58 }
 0x173   : > { %v2621_v11 = vpop.f32.mrf.mxu0 }
 0x174   : > { %v2734_v56 = vpop.f32.mrf.mxu1  ;;  %v2733_v18 = vadd.f32 %v2732_v30, %v2620_v8  ;;  %v2622_v60 = vadd.f32 %v2621_v11, %v2509_v4  ;;  %3534 = vst [vmem:[%s5897_s11 + $0xc0] sm:$0xff] %v3470_v9  ;;  %v3471_v16 = vadd.f32 %v5888_v24, %v2731_v3  ;;  %v6401_v9 = vld [vmem:[#allocation9_spill] sm:$0xff] }
 0x175   : > { %v2625_v15 = vpop.f32.mrf.mxu0 }
 0x176   : > { %v2738_v50 = vpop.f32.mrf.mxu1  ;;  %v2735_v29 = vadd.f32 %v2734_v56, %v2622_v60  ;;  %v2626_v59 = vadd.f32 %v2625_v15, %v2513_v43  ;;  %3535 = vst [vmem:[%s5897_s11 + $0xc8] sm:$0xff] %v3471_v16  ;;  %v3474_v44 = vadd.f32 %v5885_v31, %v2733_v18  ;;  %v2537_v18 = vadd.f32 %v6401_v9, %v6400_v55 }
 0x177   : > { %v2627_v41 = vpop.f32.mrf.mxu0 }
 0x178   : > { %v2740_v2 = vpop.f32.mrf.mxu1  ;;  %v2739_v36 = vadd.f32 %v2738_v50, %v2626_v59  ;;  %v2628_v39 = vadd.f32 %v2627_v41, %v2515_v14  ;;  %3538 = vst [vmem:[%s5897_s11 + $0xe0] sm:$0xff] %v3474_v44  ;;  %v3475_v21 = vadd.f32 %v5888_v24, %v2735_v29  ;;  %v6402_v29 = vld [vmem:[#allocation10_spill] sm:$0xff]  ;;  %v6403_v59 = vld [vmem:[#allocation11_spill] sm:$0xff] }
 0x179   : > { %v2629_v38 = vpop.f32.mrf.mxu0 }
 0x17a   : > { %v2742_v49 = vpop.f32.mrf.mxu1  ;;  %v2741_v25 = vadd.f32 %v2740_v2, %v2628_v39  ;;  %v2630_v52 = vadd.f32 %v2629_v38, %v2517_v12  ;;  %3539 = vst [vmem:[%s5897_s11 + $0xe8] sm:$0xff] %v3475_v21  ;;  %v3478_v20 = vadd.f32 %v5885_v31, %v2739_v36  ;;  %v2539_v12 = vadd.f32 %v6403_v59, %v6402_v29  ;;  %v6405_v38 = vld [vmem:[#allocation13_spill] sm:$0xff] }
 0x17b   : > { %v2631_v27 = vpop.f32.mrf.mxu0 }
 0x17c   : > { %v2744_v51 = vpop.f32.mrf.mxu1  ;;  %v2743_v0 = vadd.f32 %v2742_v49, %v2630_v52  ;;  %v2632_v13 = vadd.f32 %v2631_v27, %v2519_v37  ;;  %3542 = vst [vmem:[%s5897_s11 + $0x100] sm:$0xff] %v3478_v20  ;;  %v3479_v22 = vadd.f32 %v5888_v24, %v2741_v25  ;;  %v6404_v37 = vld [vmem:[#allocation12_spill] sm:$0xff]  ;;  %v6407_v20 = vld [vmem:[#allocation15_spill] sm:$0xff] }
 0x17d   : > { %v2635_v47 = vpop.f32.mrf.mxu0  ;;  %v2543_v49 = vadd.f32 %v6405_v38, %v6404_v37 }
 0x17e   : > { %v2748_v48 = vpop.f32.mrf.mxu1  ;;  %v2745_v53 = vadd.f32 %v2744_v51, %v2632_v13  ;;  %v2636_v61 = vadd.f32 %v2635_v47, %v2523_v19  ;;  %3543 = vst [vmem:[%s5897_s11 + $0x108] sm:$0xff] %v3479_v22  ;;  %v3482_v34 = vadd.f32 %v5885_v31, %v2743_v0  ;;  %v6406_v51 = vld [vmem:[#allocation14_spill] sm:$0xff] }
 0x17f   : > { %v2637_v28 = vpop.f32.mrf.mxu0  ;;  %v2545_v0 = vadd.f32 %v6407_v20, %v6406_v51 }
 0x180   : > { %v2750_v23 = vpop.f32.mrf.mxu1  ;;  %v2749_v35 = vadd.f32 %v2748_v48, %v2636_v61  ;;  %v2638_v42 = vadd.f32 %v2637_v28, %v2525_v46  ;;  %3546 = vst [vmem:[%s5897_s11 + $0x120] sm:$0xff] %v3482_v34  ;;  %v3483_v57 = vadd.f32 %v5888_v24, %v2745_v53  ;;  %v6408_v53 = vld [vmem:[#allocation17_spill] sm:$0xff]  ;;  %v6409_v61 = vld [vmem:[#allocation18_spill] sm:$0xff] }
 0x181   : > { %v2639_v7 = vpop.f32.mrf.mxu0 }
 0x182   : > { %v2752_v62 = vpop.f32.mrf.mxu1  ;;  %v2751_v1 = vadd.f32 %v2750_v23, %v2638_v42  ;;  %v2640_v45 = vadd.f32 %v2639_v7, %v2527_v10  ;;  %3547 = vst [vmem:[%s5897_s11 + $0x128] sm:$0xff] %v3483_v57  ;;  %v3486_v4 = vadd.f32 %v5885_v31, %v2749_v35  ;;  %v2547_v10 = vadd.f32 %v6409_v61, %v6408_v53  ;;  %v6411_v7 = vld [vmem:[#allocation20_spill] sm:$0xff] }
 0x183   : > { %v2641_v32 = vpop.f32.mrf.mxu0 }
 0x184   : > { %v2754_v33 = vpop.f32.mrf.mxu1  ;;  %v2753_v5 = vadd.f32 %v2752_v62, %v2640_v45  ;;  %v2642_v30 = vadd.f32 %v2641_v32, %v2529_v6  ;;  %3550 = vst [vmem:[%s5897_s11 + $0x140] sm:$0xff] %v3486_v4  ;;  %v3487_v43 = vadd.f32 %v5888_v24, %v2751_v1  ;;  %v6410_v6 = vld [vmem:[#allocation19_spill] sm:$0xff] }
 0x185   : > { %v2645_v3 = vpop.f32.mrf.mxu0  ;;  %v2549_v62 = vadd.f32 %v6411_v7, %v6410_v6 }
 0x186   : > { %v2758_v8 = vpop.f32.mrf.mxu1  ;;  %v2755_v11 = vadd.f32 %v2754_v33, %v2642_v30  ;;  %v2646_v56 = vadd.f32 %v2645_v3, %v2533_v17  ;;  %3551 = vst [vmem:[%s5897_s11 + $0x148] sm:$0xff] %v3487_v43  ;;  %v3490_v15 = vadd.f32 %v5885_v31, %v2753_v5 }
 0x187   : > { %v2647_v60 = vpop.f32.mrf.mxu0 }
 0x188   : > { %v2760_v14 = vpop.f32.mrf.mxu1  ;;  %v2759_v50 = vadd.f32 %v2758_v8, %v2646_v56  ;;  %v2648_v16 = vadd.f32 %v2647_v60, %v2535_v63  ;;  %3554 = vst [vmem:[%s5897_s11 + $0x160] sm:$0xff] %v3490_v15  ;;  %v3491_v44 = vadd.f32 %v5888_v24, %v2755_v11 }
 0x189   : > { %v2649_v41 = vpop.f32.mrf.mxu0 }
 0x18a   : > { %v2762_v2 = vpop.f32.mrf.mxu1  ;;  %v2761_v36 = vadd.f32 %v2760_v14, %v2648_v16  ;;  %v2650_v39 = vadd.f32 %v2649_v41, %v2537_v18  ;;  %3555 = vst [vmem:[%s5897_s11 + $0x168] sm:$0xff] %v3491_v44  ;;  %v3494_v52 = vadd.f32 %v5885_v31, %v2759_v50 }
 0x18b   : > { %v2651_v21 = vpop.f32.mrf.mxu0 }
 0x18c   : > { %v2764_v25 = vpop.f32.mrf.mxu1  ;;  %v2763_v19 = vadd.f32 %v2762_v2, %v2650_v39  ;;  %v2652_v27 = vadd.f32 %v2651_v21, %v2539_v12  ;;  %3558 = vst [vmem:[%s5897_s11 + $0x180] sm:$0xff] %v3494_v52  ;;  %v3495_v47 = vadd.f32 %v5888_v24, %v2761_v36 }
 0x18d   : > { %v2655_v13 = vpop.f32.mrf.mxu0 }
 0x18e   : > { %v2768_v46 = vpop.f32.mrf.mxu1  ;;  %v2765_v48 = vadd.f32 %v2764_v25, %v2652_v27  ;;  %v2656_v22 = vadd.f32 %v2655_v13, %v2543_v49  ;;  %3559 = vst [vmem:[%s5897_s11 + $0x188] sm:$0xff] %v3495_v47  ;;  %v3498_v34 = vadd.f32 %v5885_v31, %v2763_v19 }
 0x18f   : > { %v2657_v28 = vpop.f32.mrf.mxu0 }
 0x190   : > { %v2770_v23 = vpop.f32.mrf.mxu1  ;;  %v2769_v35 = vadd.f32 %v2768_v46, %v2656_v22  ;;  %v2658_v42 = vadd.f32 %v2657_v28, %v2545_v0  ;;  %3562 = vst [vmem:[%s5897_s11 + $0x1a0] sm:$0xff] %v3498_v34  ;;  %v3499_v45 = vadd.f32 %v5888_v24, %v2765_v48 }
 0x191   : > { %v2659_v57 = vpop.f32.mrf.mxu0 }
 0x192   : > { %v2772_v1 = vpop.f32.mrf.mxu1  ;;  %v2771_v54 = vadd.f32 %v2770_v23, %v2658_v42  ;;  %v2660_v17 = vadd.f32 %v2659_v57, %v2547_v10  ;;  %3563 = vst [vmem:[%s5897_s11 + $0x1a8] sm:$0xff] %v3499_v45  ;;  %v3502_v4 = vadd.f32 %v5885_v31, %v2769_v35 }
 0x193   : > { %v2661_v32 = vpop.f32.mrf.mxu0 }
 0x194   : > { %v2774_v33 = vpop.f32.mrf.mxu1  ;;  %v2773_v5 = vadd.f32 %v2772_v1, %v2660_v17  ;;  %v2662_v30 = vadd.f32 %v2661_v32, %v2549_v62  ;;  %3566 = vst [vmem:[%s5897_s11 + $0x1c0] sm:$0xff] %v3502_v4  ;;  %v3503_v63 = vadd.f32 %v5888_v24, %v2771_v54 }
 0x195   : > { %v6007_v58 = vpop.f32.mrf.mxu0 }
 0x196   : > { %v6009_v26 = vpop.f32.mrf.mxu1  ;;  %v2775_v3 = vadd.f32 %v2774_v33, %v2662_v30  ;;  %3567 = vst [vmem:[%s5897_s11 + $0x1c8] sm:$0xff] %v3503_v63  ;;  %v3506_v11 = vadd.f32 %v5885_v31, %v2773_v5 }
 0x197   : > { %v6013_v8 = vpop.f32.mrf.mxu0 }
 0x198   : > { %v6015_v43 = vpop.f32.mrf.mxu1  ;;  %3570 = vst [vmem:[%s5897_s11 + $0x1e0] sm:$0xff] %v3506_v11  ;;  %v3507_v9 = vadd.f32 %v5888_v24, %v2775_v3 }
 0x199   : > { %v6019_v56 = vpop.f32.mrf.mxu0 }
 0x19a   : > { %v6021_v55 = vpop.f32.mrf.mxu1  ;;  %3571 = vst [vmem:[%s5897_s11 + $0x1e8] sm:$0xff] %v3507_v9 }
 0x19b   : > { %v6025_v18 = vpop.f32.mrf.mxu0 }
 0x19c   : > { %v6027_v60 = vpop.f32.mrf.mxu1 }
 0x19d   : > { %v6030_v14 = vpop.f32.mrf.mxu0 }
 0x19e   : > { %v6032_v15 = vpop.f32.mrf.mxu1 }
 0x19f   : > { %v6034_v50 = vpop.f32.mrf.mxu0 }
 0x1a0   : > { %v6036_v16 = vpop.f32.mrf.mxu1 }
 0x1a1   : > { %v6038_v31 = vpop.f32.mrf.mxu0 }
 0x1a2   : > { %v6040_v29 = vpop.f32.mrf.mxu1 }
 0x1a3   : > { %v6042_v59 = vpop.f32.mrf.mxu0 }
 0x1a4   : > { %v6044_v24 = vpop.f32.mrf.mxu1 }
 0x1a5   : > { %v6046_v12 = vpop.f32.mrf.mxu0 }
 0x1a6   : > { %v6048_v41 = vpop.f32.mrf.mxu1 }
 0x1a7   : > { %v6050_v2 = vpop.f32.mrf.mxu0 }
 0x1a8   : > { %v6052_v44 = vpop.f32.mrf.mxu1 }
 0x1a9   : > { %v6054_v36 = vpop.f32.mrf.mxu0 }
 0x1aa   : > { %v6056_v39 = vpop.f32.mrf.mxu1 }
 0x1ab   : > { %v6058_v37 = vpop.f32.mrf.mxu0 }
 0x1ac   : > { %v6060_v38 = vpop.f32.mrf.mxu1 }
 0x1ad   : > { %v6062_v49 = vpop.f32.mrf.mxu0 }
 0x1ae   : > { %v6064_v21 = vpop.f32.mrf.mxu1 }
 0x1af   : > { %v6066_v25 = vpop.f32.mrf.mxu0 }
 0x1b0   : > { %v6068_v52 = vpop.f32.mrf.mxu1 }
 0x1b1   : > { %v6070_v19 = vpop.f32.mrf.mxu0 }
 0x1b2   : > { %v6072_v27 = vpop.f32.mrf.mxu1 }
 0x1b3   : > { %v6074_v51 = vpop.f32.mrf.mxu0 }
 0x1b4   : > { %v6076_v20 = vpop.f32.mrf.mxu1 }
 0x1b5   : > { %v6078_v0 = vpop.f32.mrf.mxu0 }
 0x1b6   : > { %v6080_v13 = vpop.f32.mrf.mxu1 }
 0x1b7   : > { %v6082_v46 = vpop.f32.mrf.mxu0 }
 0x1b8   : > { %v6084_v47 = vpop.f32.mrf.mxu1 }
 0x1b9   : > { %v6086_v48 = vpop.f32.mrf.mxu0 }
 0x1ba   : > { %v6088_v22 = vpop.f32.mrf.mxu1 }
 0x1bb   : > { %v6090_v53 = vpop.f32.mrf.mxu0 }
 0x1bc   : > { %v6092_v61 = vpop.f32.mrf.mxu1 }
 0x1bd   : > { %v6094_v10 = vpop.f32.mrf.mxu0 }
 0x1be   : > { %v6096_v28 = vpop.f32.mrf.mxu1 }
 0x1bf   : > { %v6098_v23 = vpop.f32.mrf.mxu0 }
 0x1c0   : > { %v6100_v34 = vpop.f32.mrf.mxu1 }
 0x1c1   : > { %v6102_v35 = vpop.f32.mrf.mxu0 }
 0x1c2   : > { %v6104_v42 = vpop.f32.mrf.mxu1 }
 0x1c3   : > { %v6106_v6 = vpop.f32.mrf.mxu0 }
 0x1c4   : > { %v6108_v7 = vpop.f32.mrf.mxu1 }
 0x1c5   : > { %v6110_v62 = vpop.f32.mrf.mxu0 }
 0x1c6   : > { %v6112_v57 = vpop.f32.mrf.mxu1 }
 0x1c7   : > { %6412 = vst [vmem:[#allocation5_spill] sm:$0xff] %v6112_v57  ;;  %v6114_v1 = vpop.f32.mrf.mxu0 }
 0x1c8   : > { %6413 = vst [vmem:[#allocation6_spill] sm:$0xff] %v6114_v1  ;;  %v6116_v45 = vpop.f32.mrf.mxu1 }
 0x1c9   : > { %6414 = vst [vmem:[#allocation7_spill] sm:$0xff] %v6116_v45  ;;  %v6118_v54 = vpop.f32.mrf.mxu0 }
 0x1ca   : > { %6415 = vst [vmem:[#allocation8_spill] sm:$0xff] %v6118_v54  ;;  %v6120_v17 = vpop.f32.mrf.mxu1 }
 0x1cb   : > { %6416 = vst [vmem:[#allocation9_spill] sm:$0xff] %v6120_v17  ;;  %v6122_v32 = vpop.f32.mrf.mxu0 }
 0x1cc   : > { %6417 = vst [vmem:[#allocation10_spill] sm:$0xff] %v6122_v32  ;;  %v6124_v33 = vpop.f32.mrf.mxu1  ;;  %v2925_v32 = vadd.f32 %v6009_v26, %v6007_v58 }
 0x1cd   : > { %6418 = vst [vmem:[#allocation11_spill] sm:$0xff] %v6124_v33  ;;  %v6126_v4 = vpop.f32.mrf.mxu0  ;;  %v6427_v33 = vld [vmem:[#allocation16_spill] sm:$0xff] }
 0x1ce   : > { %6419 = vst [vmem:[#allocation12_spill] sm:$0xff] %v6126_v4  ;;  %v6128_v5 = vpop.f32.mrf.mxu1  ;;  %v3436_v17 = vsub.s32 2, %v6427_v33 }
 0x1cf   : > { %6420 = vst [vmem:[#allocation13_spill] sm:$0xff] %v6128_v5  ;;  %v6130_v30 = vpop.f32.mrf.mxu0  ;;  %v3440_v5 = vsub.s32 3, %v6427_v33 }
 0x1d0   : > { %6421 = vst [vmem:[#allocation14_spill] sm:$0xff] %v6130_v30  ;;  %v6132_v63 = vpop.f32.mrf.mxu1 }
 0x1d1   : > { %6422 = vst [vmem:[#allocation15_spill] sm:$0xff] %v6132_v63  ;;  %v6134_v3 = vpop.f32.mrf.mxu0  ;;  %v2927_v63 = vadd.f32 %v6015_v43, %v6013_v8  ;;  %v6154_v26 = vrot.slane %v5875_v40, %v3440_v5  ;;  %v2931_v8 = vadd.f32 %v6027_v60, %v6025_v18 }
 0x1d2   : > { %6423 = vst [vmem:[#allocation17_spill] sm:$0xff] %v6134_v3  ;;  %v6136_v11 = vpop.f32.mrf.mxu1 }
 0x1d3   : > { %6424 = vst [vmem:[#allocation18_spill] sm:$0xff] %v6136_v11  ;;  %v6138_v9 = vpop.f32.mrf.mxu0 }
 0x1d4   : > { %6425 = vst [vmem:[#allocation19_spill] sm:$0xff] %v6138_v9  ;;  %v6140_v54 = vpop.f32.mrf.mxu1  ;;  %v2929_v9 = vadd.f32 %v6021_v55, %v6019_v56 }
 0x1d5   : > { %6426 = vst [vmem:[#allocation20_spill] sm:$0xff] %v6140_v54  ;;  %v3037_v4 = vpop.f32.mrf.mxu0  ;;  %v6151_v54 = vrot.slane %v5875_v40, %v3436_v17  ;;  %v2937_v40 = vadd.f32 %v6036_v16, %v6034_v50  ;;  %v2941_v50 = vadd.f32 %v6044_v24, %v6042_v59  ;;  %v2947_v59 = vadd.f32 %v6052_v44, %v6050_v2 }
 0x1d6   : > { %v3150_v45 = vpop.f32.mrf.mxu1  ;;  %v3038_v30 = vadd.f32 %v3037_v4, %v2925_v32  ;;  %v2935_v4 = vadd.f32 %v6032_v15, %v6030_v14  ;;  %v2939_v14 = vadd.f32 %v6040_v29, %v6038_v31  ;;  %v2945_v31 = vadd.f32 %v6048_v41, %v6046_v12 }
 0x1d7   : > { %v3039_v3 = vpop.f32.mrf.mxu0  ;;  %v2949_v12 = vadd.f32 %v6056_v39, %v6054_v36  ;;  %v2951_v2 = vadd.f32 %v6060_v38, %v6058_v37  ;;  %v2955_v36 = vadd.f32 %v6064_v21, %v6062_v49  ;;  %v2957_v37 = vadd.f32 %v6068_v52, %v6066_v25 }
 0x1d8   : > { %v3152_v1 = vpop.f32.mrf.mxu1  ;;  %v3151_v11 = vadd.f32 %v3150_v45, %v3038_v30  ;;  %v3040_v58 = vadd.f32 %v3039_v3, %v2927_v63  ;;  %v2959_v49 = vadd.f32 %v6072_v27, %v6070_v19  ;;  %v2961_v25 = vadd.f32 %v6076_v20, %v6074_v51 }
 0x1d9   : > { %v3041_v57 = vpop.f32.mrf.mxu0  ;;  %v2965_v19 = vadd.f32 %v6080_v13, %v6078_v0  ;;  %v2967_v51 = vadd.f32 %v6084_v47, %v6082_v46  ;;  %v2969_v0 = vadd.f32 %v6088_v22, %v6086_v48  ;;  %v2971_v46 = vadd.f32 %v6092_v61, %v6090_v53 }
 0x1da   : > { %v3154_v33 = vpop.f32.mrf.mxu1  ;;  %v3153_v43 = vadd.f32 %v3152_v1, %v3040_v58  ;;  %v3042_v32 = vadd.f32 %v3041_v57, %v2929_v9  ;;  %v3448_v45 = vadd.f32 %v6151_v54, %v3151_v11  ;;  %v2975_v48 = vadd.f32 %v6096_v28, %v6094_v10 }
 0x1db   : > { %v3043_v56 = vpop.f32.mrf.mxu0  ;;  %v2977_v53 = vadd.f32 %v6100_v34, %v6098_v23  ;;  %v2979_v10 = vadd.f32 %v6104_v42, %v6102_v35  ;;  %v2981_v23 = vadd.f32 %v6108_v7, %v6106_v6  ;;  %v6428_v35 = vld [vmem:[#allocation5_spill] sm:$0xff]  ;;  %v6429_v6 = vld [vmem:[#allocation6_spill] sm:$0xff]  ;;  %v6430_v7 = vld [vmem:[#allocation7_spill] sm:$0xff] }
 0x1dc   : > { %v3156_v55 = vpop.f32.mrf.mxu1  ;;  %v3155_v17 = vadd.f32 %v3154_v33, %v3042_v32  ;;  %v3044_v30 = vadd.f32 %v3043_v56, %v2931_v8  ;;  %3512 = vst [vmem:[%s5897_s11 + $0x10] sm:$0xff] %v3448_v45  ;;  %v3449_v18 = vadd.f32 %v6154_v26, %v3153_v43  ;;  %v2985_v42 = vadd.f32 %v6428_v35, %v6110_v62  ;;  %v6431_v62 = vld [vmem:[#allocation8_spill] sm:$0xff] }
 0x1dd   : > { %v3047_v5 = vpop.f32.mrf.mxu0 }
 0x1de   : > { %v3160_v63 = vpop.f32.mrf.mxu1  ;;  %v3157_v60 = vadd.f32 %v3156_v55, %v3044_v30  ;;  %v3048_v57 = vadd.f32 %v3047_v5, %v2935_v4  ;;  %3513 = vst [vmem:[%s5897_s11 + $0x18] sm:$0xff] %v3449_v18  ;;  %v3452_v3 = vadd.f32 %v6151_v54, %v3155_v17 }
 0x1df   : > { %v3049_v15 = vpop.f32.mrf.mxu0 }
 0x1e0   : > { %v3162_v1 = vpop.f32.mrf.mxu1  ;;  %v3161_v11 = vadd.f32 %v3160_v63, %v3048_v57  ;;  %v3050_v9 = vadd.f32 %v3049_v15, %v2937_v40  ;;  %3516 = vst [vmem:[%s5897_s11 + $0x30] sm:$0xff] %v3452_v3  ;;  %v3453_v33 = vadd.f32 %v6154_v26, %v3157_v60 }
 0x1e1   : > { %v3051_v16 = vpop.f32.mrf.mxu0 }
 0x1e2   : > { %v3164_v58 = vpop.f32.mrf.mxu1  ;;  %v3163_v8 = vadd.f32 %v3162_v1, %v3050_v9  ;;  %v3052_v43 = vadd.f32 %v3051_v16, %v2939_v14  ;;  %3517 = vst [vmem:[%s5897_s11 + $0x38] sm:$0xff] %v3453_v33  ;;  %v3456_v4 = vadd.f32 %v6151_v54, %v3161_v11 }
 0x1e3   : > { %v3053_v29 = vpop.f32.mrf.mxu0 }
 0x1e4   : > { %v3166_v32 = vpop.f32.mrf.mxu1  ;;  %v3165_v56 = vadd.f32 %v3164_v58, %v3052_v43  ;;  %v3054_v55 = vadd.f32 %v3053_v29, %v2941_v50  ;;  %3520 = vst [vmem:[%s5897_s11 + $0x50] sm:$0xff] %v3456_v4  ;;  %v3457_v17 = vadd.f32 %v6154_v26, %v3163_v8 }
 0x1e5   : > { %v3057_v24 = vpop.f32.mrf.mxu0 }
 0x1e6   : > { %v3170_v45 = vpop.f32.mrf.mxu1  ;;  %v3167_v30 = vadd.f32 %v3166_v32, %v3054_v55  ;;  %v3058_v40 = vadd.f32 %v3057_v24, %v2945_v31  ;;  %3521 = vst [vmem:[%s5897_s11 + $0x58] sm:$0xff] %v3457_v17  ;;  %v3460_v63 = vadd.f32 %v6151_v54, %v3165_v56 }
 0x1e7   : > { %v3059_v41 = vpop.f32.mrf.mxu0 }
 0x1e8   : > { %v3172_v5 = vpop.f32.mrf.mxu1  ;;  %v3171_v18 = vadd.f32 %v3170_v45, %v3058_v40  ;;  %v3060_v60 = vadd.f32 %v3059_v41, %v2947_v59  ;;  %3524 = vst [vmem:[%s5897_s11 + $0x70] sm:$0xff] %v3460_v63  ;;  %v3461_v14 = vadd.f32 %v6154_v26, %v3167_v30 }
 0x1e9   : > { %v3061_v44 = vpop.f32.mrf.mxu0 }
 0x1ea   : > { %v3174_v57 = vpop.f32.mrf.mxu1  ;;  %v3173_v15 = vadd.f32 %v3172_v5, %v3060_v60  ;;  %v3062_v1 = vadd.f32 %v3061_v44, %v2949_v12  ;;  %3525 = vst [vmem:[%s5897_s11 + $0x78] sm:$0xff] %v3461_v14  ;;  %v3464_v11 = vadd.f32 %v6151_v54, %v3171_v18 }
 0x1eb   : > { %v3063_v39 = vpop.f32.mrf.mxu0 }
 0x1ec   : > { %v3176_v3 = vpop.f32.mrf.mxu1  ;;  %v3175_v9 = vadd.f32 %v3174_v57, %v3062_v1  ;;  %v3064_v50 = vadd.f32 %v3063_v39, %v2951_v2  ;;  %3528 = vst [vmem:[%s5897_s11 + $0x90] sm:$0xff] %v3464_v11  ;;  %v3465_v58 = vadd.f32 %v6154_v26, %v3173_v15 }
 0x1ed   : > { %v3067_v38 = vpop.f32.mrf.mxu0 }
 0x1ee   : > { %v3180_v16 = vpop.f32.mrf.mxu1  ;;  %v3177_v33 = vadd.f32 %v3176_v3, %v3064_v50  ;;  %v3068_v8 = vadd.f32 %v3067_v38, %v2955_v36  ;;  %3529 = vst [vmem:[%s5897_s11 + $0x98] sm:$0xff] %v3465_v58  ;;  %v3468_v31 = vadd.f32 %v6151_v54, %v3175_v9 }
 0x1ef   : > { %v3069_v21 = vpop.f32.mrf.mxu0 }
 0x1f0   : > { %v3182_v43 = vpop.f32.mrf.mxu1  ;;  %v3181_v29 = vadd.f32 %v3180_v16, %v3068_v8  ;;  %v3070_v32 = vadd.f32 %v3069_v21, %v2957_v37  ;;  %3532 = vst [vmem:[%s5897_s11 + $0xb0] sm:$0xff] %v3468_v31  ;;  %v3469_v56 = vadd.f32 %v6154_v26, %v3177_v33 }
 0x1f1   : > { %v3071_v52 = vpop.f32.mrf.mxu0 }
 0x1f2   : > { %v3184_v4 = vpop.f32.mrf.mxu1  ;;  %v3183_v55 = vadd.f32 %v3182_v43, %v3070_v32  ;;  %v3072_v59 = vadd.f32 %v3071_v52, %v2959_v49  ;;  %3533 = vst [vmem:[%s5897_s11 + $0xb8] sm:$0xff] %v3469_v56  ;;  %v3472_v45 = vadd.f32 %v6151_v54, %v3181_v29 }
 0x1f3   : > { %v3073_v27 = vpop.f32.mrf.mxu0 }
 0x1f4   : > { %v3186_v24 = vpop.f32.mrf.mxu1  ;;  %v3185_v17 = vadd.f32 %v3184_v4, %v3072_v59  ;;  %v3074_v30 = vadd.f32 %v3073_v27, %v2961_v25  ;;  %3536 = vst [vmem:[%s5897_s11 + $0xd0] sm:$0xff] %v3472_v45  ;;  %v3473_v12 = vadd.f32 %v6154_v26, %v3183_v55  ;;  %v2987_v4 = vadd.f32 %v6430_v7, %v6429_v6 }
 0x1f5   : > { %v3077_v20 = vpop.f32.mrf.mxu0 }
 0x1f6   : > { %v3190_v40 = vpop.f32.mrf.mxu1  ;;  %v3187_v41 = vadd.f32 %v3186_v24, %v3074_v30  ;;  %v3078_v5 = vadd.f32 %v3077_v20, %v2965_v19  ;;  %3537 = vst [vmem:[%s5897_s11 + $0xd8] sm:$0xff] %v3473_v12  ;;  %v3476_v18 = vadd.f32 %v6151_v54, %v3185_v17  ;;  %v6432_v24 = vld [vmem:[#allocation9_spill] sm:$0xff]  ;;  %v6433_v12 = vld [vmem:[#allocation10_spill] sm:$0xff] }
 0x1f7   : > { %v3079_v13 = vpop.f32.mrf.mxu0  ;;  %v2989_v45 = vadd.f32 %v6432_v24, %v6431_v62 }
 0x1f8   : > { %v3192_v63 = vpop.f32.mrf.mxu1  ;;  %v3191_v60 = vadd.f32 %v3190_v40, %v3078_v5  ;;  %v3080_v2 = vadd.f32 %v3079_v13, %v2967_v51  ;;  %3540 = vst [vmem:[%s5897_s11 + $0xf0] sm:$0xff] %v3476_v18  ;;  %v3477_v57 = vadd.f32 %v6154_v26, %v3187_v41  ;;  %v6434_v41 = vld [vmem:[#allocation11_spill] sm:$0xff] }
 0x1f9   : > { %v3081_v47 = vpop.f32.mrf.mxu0  ;;  %v2991_v5 = vadd.f32 %v6434_v41, %v6433_v12 }
 0x1fa   : > { %v3194_v44 = vpop.f32.mrf.mxu1  ;;  %v3193_v14 = vadd.f32 %v3192_v63, %v3080_v2  ;;  %v3082_v15 = vadd.f32 %v3081_v47, %v2969_v0  ;;  %3541 = vst [vmem:[%s5897_s11 + $0xf8] sm:$0xff] %v3477_v57  ;;  %v3480_v36 = vadd.f32 %v6151_v54, %v3191_v60  ;;  %v6435_v2 = vld [vmem:[#allocation12_spill] sm:$0xff] }
 0x1fb   : > { %v3083_v22 = vpop.f32.mrf.mxu0 }
 0x1fc   : > { %v3196_v1 = vpop.f32.mrf.mxu1  ;;  %v3195_v39 = vadd.f32 %v3194_v44, %v3082_v15  ;;  %v3084_v3 = vadd.f32 %v3083_v22, %v2971_v46  ;;  %3544 = vst [vmem:[%s5897_s11 + $0x110] sm:$0xff] %v3480_v36  ;;  %v3481_v9 = vadd.f32 %v6154_v26, %v3193_v14  ;;  %v6436_v46 = vld [vmem:[#allocation13_spill] sm:$0xff]  ;;  %v6437_v22 = vld [vmem:[#allocation14_spill] sm:$0xff] }
 0x1fd   : > { %v3087_v61 = vpop.f32.mrf.mxu0  ;;  %v2995_v47 = vadd.f32 %v6436_v46, %v6435_v2 }
 0x1fe   : > { %v3200_v11 = vpop.f32.mrf.mxu1  ;;  %v3197_v50 = vadd.f32 %v3196_v1, %v3084_v3  ;;  %v3088_v37 = vadd.f32 %v3087_v61, %v2975_v48  ;;  %3545 = vst [vmem:[%s5897_s11 + $0x118] sm:$0xff] %v3481_v9  ;;  %v3484_v16 = vadd.f32 %v6151_v54, %v3195_v39  ;;  %v6438_v1 = vld [vmem:[#allocation15_spill] sm:$0xff]  ;;  %v6439_v9 = vld [vmem:[#allocation17_spill] sm:$0xff] }
 0x1ff   : > { %v3089_v28 = vpop.f32.mrf.mxu0  ;;  %v2997_v36 = vadd.f32 %v6438_v1, %v6437_v22 }
 0x200   : > { %v3202_v38 = vpop.f32.mrf.mxu1  ;;  %v3201_v58 = vadd.f32 %v3200_v11, %v3088_v37  ;;  %v3090_v33 = vadd.f32 %v3089_v28, %v2977_v53  ;;  %3548 = vst [vmem:[%s5897_s11 + $0x130] sm:$0xff] %v3484_v16  ;;  %v3485_v49 = vadd.f32 %v6154_v26, %v3197_v50  ;;  %v6440_v50 = vld [vmem:[#allocation18_spill] sm:$0xff] }
 0x201   : > { %v3091_v34 = vpop.f32.mrf.mxu0  ;;  %v2999_v37 = vadd.f32 %v6440_v50, %v6439_v9 }
 0x202   : > { %v3204_v8 = vpop.f32.mrf.mxu1  ;;  %v3203_v21 = vadd.f32 %v3202_v38, %v3090_v33  ;;  %v3092_v43 = vadd.f32 %v3091_v34, %v2979_v10  ;;  %3549 = vst [vmem:[%s5897_s11 + $0x138] sm:$0xff] %v3485_v49  ;;  %v3488_v32 = vadd.f32 %v6151_v54, %v3201_v58  ;;  %v6441_v33 = vld [vmem:[#allocation19_spill] sm:$0xff] }
 0x203   : > { %v3093_v31 = vpop.f32.mrf.mxu0 }
 0x204   : > { %v3206_v29 = vpop.f32.mrf.mxu1  ;;  %v3205_v25 = vadd.f32 %v3204_v8, %v3092_v43  ;;  %v3094_v52 = vadd.f32 %v3093_v31, %v2981_v23  ;;  %3552 = vst [vmem:[%s5897_s11 + $0x150] sm:$0xff] %v3488_v32  ;;  %v3489_v59 = vadd.f32 %v6154_v26, %v3203_v21  ;;  %v6442_v23 = vld [vmem:[#allocation20_spill] sm:$0xff] }
 0x205   : > { %v3097_v56 = vpop.f32.mrf.mxu0  ;;  %v3001_v34 = vadd.f32 %v6442_v23, %v6441_v33 }
 0x206   : > { %v3210_v55 = vpop.f32.mrf.mxu1  ;;  %v3207_v19 = vadd.f32 %v3206_v29, %v3094_v52  ;;  %v3098_v27 = vadd.f32 %v3097_v56, %v2985_v42  ;;  %3553 = vst [vmem:[%s5897_s11 + $0x158] sm:$0xff] %v3489_v59  ;;  %v3492_v51 = vadd.f32 %v6151_v54, %v3205_v25 }
 0x207   : > { %v3099_v17 = vpop.f32.mrf.mxu0 }
 0x208   : > { %v3212_v30 = vpop.f32.mrf.mxu1  ;;  %v3211_v20 = vadd.f32 %v3210_v55, %v3098_v27  ;;  %v3100_v40 = vadd.f32 %v3099_v17, %v2987_v4  ;;  %3556 = vst [vmem:[%s5897_s11 + $0x170] sm:$0xff] %v3492_v51  ;;  %v3493_v63 = vadd.f32 %v6154_v26, %v3207_v19 }
 0x209   : > { %v3101_v0 = vpop.f32.mrf.mxu0 }
 0x20a   : > { %v3214_v13 = vpop.f32.mrf.mxu1  ;;  %v3213_v18 = vadd.f32 %v3212_v30, %v3100_v40  ;;  %v3102_v60 = vadd.f32 %v3101_v0, %v2989_v45  ;;  %3557 = vst [vmem:[%s5897_s11 + $0x178] sm:$0xff] %v3493_v63  ;;  %v3496_v14 = vadd.f32 %v6151_v54, %v3211_v20 }
 0x20b   : > { %v3103_v44 = vpop.f32.mrf.mxu0 }
 0x20c   : > { %v3216_v57 = vpop.f32.mrf.mxu1  ;;  %v3215_v15 = vadd.f32 %v3214_v13, %v3102_v60  ;;  %v3104_v48 = vadd.f32 %v3103_v44, %v2991_v5  ;;  %3560 = vst [vmem:[%s5897_s11 + $0x190] sm:$0xff] %v3496_v14  ;;  %v3497_v53 = vadd.f32 %v6154_v26, %v3213_v18 }
 0x20d   : > { %v3107_v39 = vpop.f32.mrf.mxu0 }
 0x20e   : > { %v3220_v3 = vpop.f32.mrf.mxu1  ;;  %v3217_v61 = vadd.f32 %v3216_v57, %v3104_v48  ;;  %v3108_v11 = vadd.f32 %v3107_v39, %v2995_v47  ;;  %3561 = vst [vmem:[%s5897_s11 + $0x198] sm:$0xff] %v3497_v53  ;;  %v3500_v38 = vadd.f32 %v6151_v54, %v3215_v15 }
 0x20f   : > { %v3109_v10 = vpop.f32.mrf.mxu0 }
 0x210   : > { %v3222_v28 = vpop.f32.mrf.mxu1  ;;  %v3221_v16 = vadd.f32 %v3220_v3, %v3108_v11  ;;  %v3110_v58 = vadd.f32 %v3109_v10, %v2997_v36  ;;  %3564 = vst [vmem:[%s5897_s11 + $0x1b0] sm:$0xff] %v3500_v38  ;;  %v3501_v21 = vadd.f32 %v6154_v26, %v3217_v61 }
 0x211   : > { %v3111_v8 = vpop.f32.mrf.mxu0 }
 0x212   : > { %v3224_v49 = vpop.f32.mrf.mxu1  ;;  %v3223_v43 = vadd.f32 %v3222_v28, %v3110_v58  ;;  %v3112_v35 = vadd.f32 %v3111_v8, %v2999_v37  ;;  %3565 = vst [vmem:[%s5897_s11 + $0x1b8] sm:$0xff] %v3501_v21  ;;  %v3504_v31 = vadd.f32 %v6151_v54, %v3221_v16 }
 0x213   : > { %v3113_v42 = vpop.f32.mrf.mxu0 }
 0x214   : > { %v3225_v29 = vadd.f32 %v3224_v49, %v3112_v35  ;;  %v3114_v32 = vadd.f32 %v3113_v42, %v3001_v34  ;;  %v3226_v25 = vpop.f32.mrf.mxu1  ;;  %3568 = vst [vmem:[%s5897_s11 + $0x1d0] sm:$0xff] %v3504_v31  ;;  %v3505_v52 = vadd.f32 %v6154_v26, %v3223_v43 }
 0x216   : > { %v3227_v6 = vadd.f32 %v3226_v25, %v3114_v32  ;;  %3569 = vst [vmem:[%s5897_s11 + $0x1d8] sm:$0xff] %v3505_v52  ;;  %v3508_v7 = vadd.f32 %v6151_v54, %v3225_v29 }
 0x218   : > { %3572 = vst [vmem:[%s5897_s11 + $0x1f0] sm:$0xff] %v3508_v7  ;;  %v3509_v4 = vadd.f32 %v6154_v26, %v3227_v6 }
 0x21a   : > { %3573 = vst [vmem:[%s5897_s11 + $0x1f8] sm:$0xff] %v3509_v4 }
 0x21b   : > { %4501 = shalt.err (!%p4498_p5)
}
 0x21c   : > { %s4502_s30 = scalar_lea.hbm %s6280_s23, 8192  ;;  %s4506_s6 = scalar_lea.hbm %s6337_s3, 16384 }
 0x21d   : > { %p4503_p6 = scmp.ne.s32.totalorder %s6280_s23, %s4502_s30  ;;  %p4507_p10 = scmp.lt.s32.totalorder %s6280_s23, %s6337_s3 }
 0x21e   : > { %p4508_p11 = scmp.lt.s32.totalorder %s4506_s6, %s4502_s30 }
 0x21f   : > { %p4504_p7 = pnand %p4503_p6, %p4629_p4 }
 0x220   : > { %p4509_p12 = por %p4508_p11, %p4507_p10 }
 0x221   : > { %p4505_p9 = pneg %p4504_p7 }
 0x223   : > { %p4510_p13 = pnand %p4509_p12, %p4505_p9 }
 0x225   : > { %4513 = shalt.err (!%p4510_p13)
}
 0x226   : > { %s4567_s10 = smov 512   ;;  %s4568_s11 = smov 32  }
 0x227   : > { %4046 = dma.vmem_to_hbm [thread:$0]  (%p4629_p4), %s6282_s18, 8192, %s6280_s23, %s6289_s15, %s4567_s10, %s4567_s10, %s4568_s11  }
 0x228 PF: > { %p4052_p0 = scmp.ge.s32.totalorder %s4564_s17, 2  ;;  %s3606_s7 = sand.u32 1, %s4544_s12  }
 0x229   : > { %s3607_s19 = scalar_lea.sflag [#allocation3], %s3606_s7 }
 0x22a   : > { %p4049_p1 = pnand %p4052_p0, %p4636_p8 }
 0x22c   : > { %p4050_p2 = pneg %p4049_p1 }
 0x22e   : > { %4539 = dma.done.wait (%p4050_p2), %s3607_s19, 8192  }
 0x22f   : > { %4541 = vsyncadd (%p4050_p2), %s3607_s19, 4294959104  ;;  %s16_s17 = sadd.s32 1, %s4564_s17   ;;  %s6443_s12 = smov %s4548_s13 }
 0x230   : > { %p13_p3 = scmp.ge.s32.totalorder %s16_s17, 4   ;;  %s6444_s13 = smov %s4552_s14 }
 0x231   : > { %s6445_s14 = smov %s4642_s25  ;;  %s6446_s15 = smov %s4560_s16 }
 0x232   : > { %s6447_s16 = smov %s6449_s20  ;;  %15 = sbr.rel (!%p13_p3) target bundleno = 4 (0x4), region = 81 }
 0x237   :  { %3612 = vsyncpa [#allocation3], 1 }
 0x238   :  { %3614 = vsyncpa [#allocation3 + $0x1], 1 }

</bundles_post_ra>
